<compile_context>
chip_gen: v7x
topology: tpu7x:2x2x1
jax: 0.10.0
libtpu: 0.0.40
codegen_flags: <defaults>
</compile_context>

<pallas_src>
import math

import numpy as np
import jax
import jax.numpy as jnp
from jax import lax
from jax.experimental import pallas as pl
from jax.experimental.pallas import tpu as pltpu

KSIZE = 11
HALF = KSIZE // 2
SIGMA = 1.5
L = 2.0
K1 = 1e-4
K2 = 1e-3
_C1 = (K1 * L) ** 2
_C2 = (K2 * L) ** 2


def _gaussian_window_1d(size: int = KSIZE, sigma: float = SIGMA) -> np.ndarray:
    """Matches SSIMLoss._cal_gaussian_kernel's 1D window (2D window = outer product)."""
    g = np.array(
        [math.exp(-((x - size // 2) ** 2) / float(2 * sigma ** 2)) for x in range(size)],
        dtype=np.float64,
    )
    g = g / g.sum()
    return g.astype(np.float32)  # (11,)


def _make_ssim_kernel(B: int, H: int, W_pad: int, Ho: int,
                      w1d: np.ndarray, NC: int, unroll: bool):
    w = [float(v) for v in w1d]           # static immediates
    guard_tail = (NC % B) != 0

    def vpass(src_ref):
        # Vertical (sublane) 11-tap pass reading shifted row slices straight from
        # VMEM (src_ref is an (H, W_pad) ref / ref-view, so no full-plane value is
        # held live).  Symmetric weights: add paired taps first, scale once.
        def tap(dy):
            return src_ref[dy:dy + Ho, :]

        acc = w[HALF] * tap(HALF)
        for d in range(HALF):
            acc = acc + w[d] * (tap(d) + tap(KSIZE - 1 - d))
        return acc  # (Ho, W_pad) f32

    def hpass(v):
        # Horizontal (lane) 11-tap pass via full-width XLU rotations (co-issue with
        # the VPU).  Columns j >= Wo hold wrapped garbage; sliced off in the wrapper.
        def rot(dx):
            return v if dx == 0 else pltpu.roll(v, shift=W_pad - dx, axis=1)

        acc = w[HALF] * rot(HALF)
        for d in range(HALF):
            acc = acc + w[d] * (rot(d) + rot(KSIZE - 1 - d))
        return acc  # (Ho, W_pad) f32

    def kernel(img0_ref, img1_ref, out_ref, p00_ref, p11_ref, p01_ref):
        def compute(b):
            # Second-moment product planes, materialized once per plane into VMEM
            # scratch (each statement streams ref->ref; no plane value kept live).
            p00_ref[...] = img0_ref[b] * img0_ref[b]
            p11_ref[...] = img1_ref[b] * img1_ref[b]
            p01_ref[...] = img0_ref[b] * img1_ref[b]

            mu0 = hpass(vpass(img0_ref.at[b]))
            mu1 = hpass(vpass(img1_ref.at[b]))
            s00 = hpass(vpass(p00_ref))
            s11 = hpass(vpass(p11_ref))
            s01 = hpass(vpass(p01_ref))

            mu0_sq = mu0 * mu0
            mu1_sq = mu1 * mu1
            m01 = mu0 * mu1                       # hoisted, reused below
            var0 = s00 - mu0_sq
            var1 = s11 - mu1_sq
            covar = s01 - m01

            num = (2.0 * m01 + _C1) * (2.0 * covar + _C2)
            den = (mu0_sq + mu1_sq + _C1) * (var0 + var1 + _C2)
            r = pl.reciprocal(den, approx=True)   # EUP slot, off the VALU path
            r = r * (2.0 - den * r)               # one Newton step -> f32 accuracy
            out_ref[b] = 1.0 - num * r

        if guard_tail:
            first = pl.program_id(0) * B

            def body(b, carry):
                @pl.when(first + b < NC)
                def _():
                    compute(b)
                return carry
        else:
            def body(b, carry):
                compute(b)
                return carry

        lax.fori_loop(0, B, body, 0, unroll=unroll)

    return kernel


def ssim_loss(img0: jax.Array, img1: jax.Array) -> jax.Array:
    """img0, img1: (N, C, H, W) in (-1, 1), C == 3. Returns (N, C, H-10, W-10) f32."""
    N, C, H, W = img0.shape
    assert C == 3, "SSIMLoss uses a 3-group depthwise conv (3-channel images)."
    assert H >= KSIZE and W >= KSIZE
    Ho, Wo = H - KSIZE + 1, W - KSIZE + 1
    NC = N * C

    x0 = img0.reshape(NC, H, W).astype(jnp.float32)
    x1 = img1.reshape(NC, H, W).astype(jnp.float32)

    # Always lane-dense: zero-pad W to the next multiple of 128.  Pad columns only
    # feed the discarded j >= Wo outputs, so semantics are unchanged.
    W_pad = -(-W // 128) * 128
    if W_pad != W:
        pad = ((0, 0), (0, 0), (0, W_pad - W))
        x0 = jnp.pad(x0, pad)
        x1 = jnp.pad(x1, pad)

    # ---- generation-aware VMEM budget -> planes per grid step (B) ----
    try:
        vmem_cap = int(pltpu.get_tpu_info().vmem_capacity_bytes)
    except Exception:  # pragma: no cover - conservative fallback (v7x per-TC VMEM)
        vmem_cap = 64 << 20
    per_plane_block = 2 * 2 * 4 * H * W_pad + 2 * 4 * Ho * W_pad   # dbl-buffered I/O
    fixed_bytes = 3 * 4 * H * W_pad + 16 * 4 * Ho * W_pad          # scratch + temps
    budget = int(0.45 * vmem_cap)
    B = int(max(1, min(NC, (budget - fixed_bytes) // per_plane_block)))
    if NC >= 2:
        # Keep >= 2 grid steps so ("parallel",) can shard plane-blocks across the
        # two v7x TensorCores; costs at most one extra ~0.35us step elsewhere.
        B = min(B, -(-NC // 2))

    footprint = B * per_plane_block + fixed_bytes
    vmem_limit = int(min(max(footprint * 1.3, 32 << 20), 0.8 * vmem_cap))

    grid = (pl.cdiv(NC, B),)
    kernel = _make_ssim_kernel(B, H, W_pad, Ho, _gaussian_window_1d(), NC,
                               unroll=(B <= 2))

    out = pl.pallas_call(
        kernel,
        out_shape=jax.ShapeDtypeStruct((NC, Ho, W_pad), jnp.float32),
        grid=grid,
        in_specs=[
            pl.BlockSpec((B, H, W_pad), lambda i: (i, 0, 0)),
            pl.BlockSpec((B, H, W_pad), lambda i: (i, 0, 0)),
        ],
        out_specs=pl.BlockSpec((B, Ho, W_pad), lambda i: (i, 0, 0)),
        scratch_shapes=[pltpu.VMEM((H, W_pad), jnp.float32)] * 3,
        compiler_params=pltpu.CompilerParams(
            dimension_semantics=("parallel",),
            vmem_limit_bytes=vmem_limit,
        ),
    )(x0, x1)

    return out[:, :, :Wo].reshape(N, C, Ho, Wo)


def _ssim_loss_ref_np(img0: np.ndarray, img1: np.ndarray) -> np.ndarray:
    """Pure NumPy float64 reference mirroring the PyTorch module."""
    img0 = np.asarray(img0, np.float64)
    img1 = np.asarray(img1, np.float64)
    N, C, H, W = img0.shape
    g = _gaussian_window_1d().astype(np.float64)
    w2d = np.outer(g, g)
    Ho, Wo = H - KSIZE + 1, W - KSIZE + 1

    def conv(x):
        out = np.zeros((N, C, Ho, Wo), np.float64)
        for dy in range(KSIZE):
            for dx in range(KSIZE):
                out += w2d[dy, dx] * x[:, :, dy:dy + Ho, dx:dx + Wo]
        return out

    mu0, mu1 = conv(img0), conv(img1)
    mu0_sq, mu1_sq = mu0 * mu0, mu1 * mu1
    var0 = conv(img0 * img0) - mu0_sq
    var1 = conv(img1 * img1) - mu1_sq
    covar = conv(img0 * img1) - mu0 * mu1
    num = (2.0 * mu0 * mu1 + _C1) * (2.0 * covar + _C2)
    den = (mu0_sq + mu1_sq + _C1) * (var0 + var1 + _C2)
    return 1.0 - num / den


if __name__ == "__main__":
    key = jax.random.PRNGKey(0)
    k0, k1 = jax.random.split(key)
    N, C, H, W = 2, 3, 16, 16
    # Inputs in (-1, 1) as the module expects.
    img0 = jax.random.uniform(k0, (N, C, H, W), jnp.float32, minval=-1.0, maxval=1.0)
    img1 = jax.random.uniform(k1, (N, C, H, W), jnp.float32, minval=-1.0, maxval=1.0)

    out = jax.block_until_ready(jax.jit(ssim_loss)(img0, img1))
    assert out.shape == (N, C, H - 10, W - 10)
    assert out.dtype == jnp.float32
    ref = _ssim_loss_ref_np(np.asarray(img0), np.asarray(img1))
    np.testing.assert_allclose(np.asarray(out), ref, rtol=2e-3, atol=2e-3)

    # Secondary small shape: exercises the W-padding path (140 -> 256 lanes), a
    # non-divisible plane count (pl.when tail guard) and H not a multiple of 8.
    k2, k3 = jax.random.split(k1)
    N2, C2, H2, W2 = 1, 3, 21, 140
    a0 = jax.random.uniform(k2, (N2, C2, H2, W2), jnp.float32, minval=-1.0, maxval=1.0)
    a1 = jax.random.uniform(k3, (N2, C2, H2, W2), jnp.float32, minval=-1.0, maxval=1.0)
    out2 = jax.block_until_ready(jax.jit(ssim_loss)(a0, a1))
    ref2 = _ssim_loss_ref_np(np.asarray(a0), np.asarray(a1))
    np.testing.assert_allclose(np.asarray(out2), ref2, rtol=2e-3, atol=2e-3)

    print("KERNEL_OK")
</pallas_src>

<mosaic_0001>
module attributes {stable_mosaic.version = 11 : i64} {
  func.func @kernel(%arg0: i32, %arg1: memref<3x16x128xf32, #tpu.memory_space<vmem>>, %arg2: memref<3x16x128xf32, #tpu.memory_space<vmem>>, %arg3: memref<3x6x128xf32, #tpu.memory_space<vmem>>, %arg4: memref<16x128xf32, #tpu.memory_space<vmem>>, %arg5: memref<16x128xf32, #tpu.memory_space<vmem>>, %arg6: memref<16x128xf32, #tpu.memory_space<vmem>>) attributes {dimension_semantics = [#tpu.dimension_semantics<parallel>], iteration_bounds = array<i64: 2>, scalar_prefetch = 0 : i64, scratch_operands = 3 : i64, tpu.core_type = #tpu.core_type<tc>, window_params = [{transform_indices = @transform_0, window_bounds = array<i64: 3, 16, 128>}, {transform_indices = @transform_1, window_bounds = array<i64: 3, 16, 128>}, {transform_indices = @transform_2, window_bounds = array<i64: 3, 6, 128>}]} {
    %c0_i32 = arith.constant 0 : i32
    %c3_i32 = arith.constant 3 : i32
    %0 = arith.addi %c0_i32, %c3_i32 : i32
    %c1_i32 = arith.constant 1 : i32
    scf.for %arg7 = %c0_i32 to %0 step %c1_i32  : i32 {
      %1 = arith.index_cast %arg7 : i32 to index
      %c0 = arith.constant 0 : index
      %c0_1 = arith.constant 0 : index
      %2 = vector.load %arg1[%1, %c0, %c0_1] : memref<3x16x128xf32, #tpu.memory_space<vmem>>, vector<1x16x128xf32>
      %3 = vector.shape_cast %2 : vector<1x16x128xf32> to vector<16x128xf32>
      %4 = arith.index_cast %arg7 : i32 to index
      %c0_2 = arith.constant 0 : index
      %c0_3 = arith.constant 0 : index
      %5 = vector.load %arg1[%4, %c0_2, %c0_3] : memref<3x16x128xf32, #tpu.memory_space<vmem>>, vector<1x16x128xf32>
      %6 = vector.shape_cast %5 : vector<1x16x128xf32> to vector<16x128xf32>
      %7 = arith.mulf %3, %6 : vector<16x128xf32>
      %c0_4 = arith.constant 0 : index
      %c0_5 = arith.constant 0 : index
      %8 = vector.load %arg4[%c0_4, %c0_5] : memref<16x128xf32, #tpu.memory_space<vmem>>, vector<16x128xf32>
      tpu.vector_store %arg4[%c0_4, %c0_5], %7 {strides = array<i32>} : memref<16x128xf32, #tpu.memory_space<vmem>>, vector<16x128xf32>,
      %9 = arith.index_cast %arg7 : i32 to index
      %c0_6 = arith.constant 0 : index
      %c0_7 = arith.constant 0 : index
      %10 = vector.load %arg2[%9, %c0_6, %c0_7] : memref<3x16x128xf32, #tpu.memory_space<vmem>>, vector<1x16x128xf32>
      %11 = vector.shape_cast %10 : vector<1x16x128xf32> to vector<16x128xf32>
      %12 = arith.index_cast %arg7 : i32 to index
      %c0_8 = arith.constant 0 : index
      %c0_9 = arith.constant 0 : index
      %13 = vector.load %arg2[%12, %c0_8, %c0_9] : memref<3x16x128xf32, #tpu.memory_space<vmem>>, vector<1x16x128xf32>
      %14 = vector.shape_cast %13 : vector<1x16x128xf32> to vector<16x128xf32>
      %15 = arith.mulf %11, %14 : vector<16x128xf32>
      %c0_10 = arith.constant 0 : index
      %c0_11 = arith.constant 0 : index
      %16 = vector.load %arg5[%c0_10, %c0_11] : memref<16x128xf32, #tpu.memory_space<vmem>>, vector<16x128xf32>
      tpu.vector_store %arg5[%c0_10, %c0_11], %15 {strides = array<i32>} : memref<16x128xf32, #tpu.memory_space<vmem>>, vector<16x128xf32>,
      %17 = arith.index_cast %arg7 : i32 to index
      %c0_12 = arith.constant 0 : index
      %c0_13 = arith.constant 0 : index
      %18 = vector.load %arg1[%17, %c0_12, %c0_13] : memref<3x16x128xf32, #tpu.memory_space<vmem>>, vector<1x16x128xf32>
      %19 = vector.shape_cast %18 : vector<1x16x128xf32> to vector<16x128xf32>
      %20 = arith.index_cast %arg7 : i32 to index
      %c0_14 = arith.constant 0 : index
      %c0_15 = arith.constant 0 : index
      %21 = vector.load %arg2[%20, %c0_14, %c0_15] : memref<3x16x128xf32, #tpu.memory_space<vmem>>, vector<1x16x128xf32>
      %22 = vector.shape_cast %21 : vector<1x16x128xf32> to vector<16x128xf32>
      %23 = arith.mulf %19, %22 : vector<16x128xf32>
      %c0_16 = arith.constant 0 : index
      %c0_17 = arith.constant 0 : index
      %24 = vector.load %arg6[%c0_16, %c0_17] : memref<16x128xf32, #tpu.memory_space<vmem>>, vector<16x128xf32>
      tpu.vector_store %arg6[%c0_16, %c0_17], %23 {strides = array<i32>} : memref<16x128xf32, #tpu.memory_space<vmem>>, vector<16x128xf32>,
      %c0_i32_18 = arith.constant 0 : i32
      %c0_i32_19 = arith.constant 0 : i32
      %25 = tpu.memref_slice %arg1[%arg7, %c0_i32_18, %c0_i32_19] : memref<3x16x128xf32, #tpu.memory_space<vmem>> -> memref<1x16x128xf32, #tpu.memory_space<vmem>>
      %26 = tpu.memref_squeeze %25 : memref<1x16x128xf32, #tpu.memory_space<vmem>> -> memref<16x128xf32, #tpu.memory_space<vmem>>
      %c5 = arith.constant 5 : index
      %c0_20 = arith.constant 0 : index
      %27 = vector.load %26[%c5, %c0_20] : memref<16x128xf32, #tpu.memory_space<vmem>>, vector<6x128xf32>
      %cst = arith.constant 0.266011715 : f32
      %28 = vector.broadcast %cst : f32 to vector<6x128xf32>
      %29 = arith.mulf %28, %27 : vector<6x128xf32>
      %c0_i32_21 = arith.constant 0 : i32
      %c0_i32_22 = arith.constant 0 : i32
      %30 = tpu.memref_slice %arg1[%arg7, %c0_i32_21, %c0_i32_22] : memref<3x16x128xf32, #tpu.memory_space<vmem>> -> memref<1x16x128xf32, #tpu.memory_space<vmem>>
      %31 = tpu.memref_squeeze %30 : memref<1x16x128xf32, #tpu.memory_space<vmem>> -> memref<16x128xf32, #tpu.memory_space<vmem>>
      %c0_23 = arith.constant 0 : index
      %c0_24 = arith.constant 0 : index
      %32 = vector.load %31[%c0_23, %c0_24] : memref<16x128xf32, #tpu.memory_space<vmem>>, vector<6x128xf32>
      %c0_i32_25 = arith.constant 0 : i32
      %c0_i32_26 = arith.constant 0 : i32
      %33 = tpu.memref_slice %arg1[%arg7, %c0_i32_25, %c0_i32_26] : memref<3x16x128xf32, #tpu.memory_space<vmem>> -> memref<1x16x128xf32, #tpu.memory_space<vmem>>
      %34 = tpu.memref_squeeze %33 : memref<1x16x128xf32, #tpu.memory_space<vmem>> -> memref<16x128xf32, #tpu.memory_space<vmem>>
      %c10 = arith.constant 10 : index
      %c0_27 = arith.constant 0 : index
      %35 = vector.load %34[%c10, %c0_27] : memref<16x128xf32, #tpu.memory_space<vmem>>, vector<6x128xf32>
      %36 = arith.addf %32, %35 : vector<6x128xf32>
      %cst_28 = arith.constant 0.00102838012 : f32
      %37 = vector.broadcast %cst_28 : f32 to vector<6x128xf32>
      %38 = arith.mulf %37, %36 : vector<6x128xf32>
      %39 = arith.addf %29, %38 : vector<6x128xf32>
      %c0_i32_29 = arith.constant 0 : i32
      %c0_i32_30 = arith.constant 0 : i32
      %40 = tpu.memref_slice %arg1[%arg7, %c0_i32_29, %c0_i32_30] : memref<3x16x128xf32, #tpu.memory_space<vmem>> -> memref<1x16x128xf32, #tpu.memory_space<vmem>>
      %41 = tpu.memref_squeeze %40 : memref<1x16x128xf32, #tpu.memory_space<vmem>> -> memref<16x128xf32, #tpu.memory_space<vmem>>
      %c1 = arith.constant 1 : index
      %c0_31 = arith.constant 0 : index
      %42 = vector.load %41[%c1, %c0_31] : memref<16x128xf32, #tpu.memory_space<vmem>>, vector<6x128xf32>
      %c0_i32_32 = arith.constant 0 : i32
      %c0_i32_33 = arith.constant 0 : i32
      %43 = tpu.memref_slice %arg1[%arg7, %c0_i32_32, %c0_i32_33] : memref<3x16x128xf32, #tpu.memory_space<vmem>> -> memref<1x16x128xf32, #tpu.memory_space<vmem>>
      %44 = tpu.memref_squeeze %43 : memref<1x16x128xf32, #tpu.memory_space<vmem>> -> memref<16x128xf32, #tpu.memory_space<vmem>>
      %c9 = arith.constant 9 : index
      %c0_34 = arith.constant 0 : index
      %45 = vector.load %44[%c9, %c0_34] : memref<16x128xf32, #tpu.memory_space<vmem>>, vector<6x128xf32>
      %46 = arith.addf %42, %45 : vector<6x128xf32>
      %cst_35 = arith.constant 0.00759875821 : f32
      %47 = vector.broadcast %cst_35 : f32 to vector<6x128xf32>
      %48 = arith.mulf %47, %46 : vector<6x128xf32>
      %49 = arith.addf %39, %48 : vector<6x128xf32>
      %c0_i32_36 = arith.constant 0 : i32
      %c0_i32_37 = arith.constant 0 : i32
      %50 = tpu.memref_slice %arg1[%arg7, %c0_i32_36, %c0_i32_37] : memref<3x16x128xf32, #tpu.memory_space<vmem>> -> memref<1x16x128xf32, #tpu.memory_space<vmem>>
      %51 = tpu.memref_squeeze %50 : memref<1x16x128xf32, #tpu.memory_space<vmem>> -> memref<16x128xf32, #tpu.memory_space<vmem>>
      %c2 = arith.constant 2 : index
      %c0_38 = arith.constant 0 : index
      %52 = vector.load %51[%c2, %c0_38] : memref<16x128xf32, #tpu.memory_space<vmem>>, vector<6x128xf32>
      %c0_i32_39 = arith.constant 0 : i32
      %c0_i32_40 = arith.constant 0 : i32
      %53 = tpu.memref_slice %arg1[%arg7, %c0_i32_39, %c0_i32_40] : memref<3x16x128xf32, #tpu.memory_space<vmem>> -> memref<1x16x128xf32, #tpu.memory_space<vmem>>
      %54 = tpu.memref_squeeze %53 : memref<1x16x128xf32, #tpu.memory_space<vmem>> -> memref<16x128xf32, #tpu.memory_space<vmem>>
      %c8 = arith.constant 8 : index
      %c0_41 = arith.constant 0 : index
      %55 = vector.load %54[%c8, %c0_41] : memref<16x128xf32, #tpu.memory_space<vmem>>, vector<6x128xf32>
      %56 = arith.addf %52, %55 : vector<6x128xf32>
      %cst_42 = arith.constant 0.0360007733 : f32
      %57 = vector.broadcast %cst_42 : f32 to vector<6x128xf32>
      %58 = arith.mulf %57, %56 : vector<6x128xf32>
      %59 = arith.addf %49, %58 : vector<6x128xf32>
      %c0_i32_43 = arith.constant 0 : i32
      %c0_i32_44 = arith.constant 0 : i32
      %60 = tpu.memref_slice %arg1[%arg7, %c0_i32_43, %c0_i32_44] : memref<3x16x128xf32, #tpu.memory_space<vmem>> -> memref<1x16x128xf32, #tpu.memory_space<vmem>>
      %61 = tpu.memref_squeeze %60 : memref<1x16x128xf32, #tpu.memory_space<vmem>> -> memref<16x128xf32, #tpu.memory_space<vmem>>
      %c3 = arith.constant 3 : index
      %c0_45 = arith.constant 0 : index
      %62 = vector.load %61[%c3, %c0_45] : memref<16x128xf32, #tpu.memory_space<vmem>>, vector<6x128xf32>
      %c0_i32_46 = arith.constant 0 : i32
      %c0_i32_47 = arith.constant 0 : i32
      %63 = tpu.memref_slice %arg1[%arg7, %c0_i32_46, %c0_i32_47] : memref<3x16x128xf32, #tpu.memory_space<vmem>> -> memref<1x16x128xf32, #tpu.memory_space<vmem>>
      %64 = tpu.memref_squeeze %63 : memref<1x16x128xf32, #tpu.memory_space<vmem>> -> memref<16x128xf32, #tpu.memory_space<vmem>>
      %c7 = arith.constant 7 : index
      %c0_48 = arith.constant 0 : index
      %65 = vector.load %64[%c7, %c0_48] : memref<16x128xf32, #tpu.memory_space<vmem>>, vector<6x128xf32>
      %66 = arith.addf %62, %65 : vector<6x128xf32>
      %cst_49 = arith.constant 0.109360687 : f32
      %67 = vector.broadcast %cst_49 : f32 to vector<6x128xf32>
      %68 = arith.mulf %67, %66 : vector<6x128xf32>
      %69 = arith.addf %59, %68 : vector<6x128xf32>
      %c0_i32_50 = arith.constant 0 : i32
      %c0_i32_51 = arith.constant 0 : i32
      %70 = tpu.memref_slice %arg1[%arg7, %c0_i32_50, %c0_i32_51] : memref<3x16x128xf32, #tpu.memory_space<vmem>> -> memref<1x16x128xf32, #tpu.memory_space<vmem>>
      %71 = tpu.memref_squeeze %70 : memref<1x16x128xf32, #tpu.memory_space<vmem>> -> memref<16x128xf32, #tpu.memory_space<vmem>>
      %c4 = arith.constant 4 : index
      %c0_52 = arith.constant 0 : index
      %72 = vector.load %71[%c4, %c0_52] : memref<16x128xf32, #tpu.memory_space<vmem>>, vector<6x128xf32>
      %c0_i32_53 = arith.constant 0 : i32
      %c0_i32_54 = arith.constant 0 : i32
      %73 = tpu.memref_slice %arg1[%arg7, %c0_i32_53, %c0_i32_54] : memref<3x16x128xf32, #tpu.memory_space<vmem>> -> memref<1x16x128xf32, #tpu.memory_space<vmem>>
      %74 = tpu.memref_squeeze %73 : memref<1x16x128xf32, #tpu.memory_space<vmem>> -> memref<16x128xf32, #tpu.memory_space<vmem>>
      %c6 = arith.constant 6 : index
      %c0_55 = arith.constant 0 : index
      %75 = vector.load %74[%c6, %c0_55] : memref<16x128xf32, #tpu.memory_space<vmem>>, vector<6x128xf32>
      %76 = arith.addf %72, %75 : vector<6x128xf32>
      %cst_56 = arith.constant 0.213005543 : f32
      %77 = vector.broadcast %cst_56 : f32 to vector<6x128xf32>
      %78 = arith.mulf %77, %76 : vector<6x128xf32>
      %79 = arith.addf %69, %78 : vector<6x128xf32>
      %c123_i32 = arith.constant 123 : i32
      %80 = tpu.dynamic_rotate %79 by %c123_i32 dim 1 : vector<6x128xf32>, i32 -> vector<6x128xf32>
      %cst_57 = arith.constant 0.266011715 : f32
      %81 = vector.broadcast %cst_57 : f32 to vector<6x128xf32>
      %82 = arith.mulf %81, %80 : vector<6x128xf32>
      %c118_i32 = arith.constant 118 : i32
      %83 = tpu.dynamic_rotate %79 by %c118_i32 dim 1 : vector<6x128xf32>, i32 -> vector<6x128xf32>
      %84 = arith.addf %79, %83 : vector<6x128xf32>
      %cst_58 = arith.constant 0.00102838012 : f32
      %85 = vector.broadcast %cst_58 : f32 to vector<6x128xf32>
      %86 = arith.mulf %85, %84 : vector<6x128xf32>
      %87 = arith.addf %82, %86 : vector<6x128xf32>
      %c127_i32 = arith.constant 127 : i32
      %88 = tpu.dynamic_rotate %79 by %c127_i32 dim 1 : vector<6x128xf32>, i32 -> vector<6x128xf32>
      %c119_i32 = arith.constant 119 : i32
      %89 = tpu.dynamic_rotate %79 by %c119_i32 dim 1 : vector<6x128xf32>, i32 -> vector<6x128xf32>
      %90 = arith.addf %88, %89 : vector<6x128xf32>
      %cst_59 = arith.constant 0.00759875821 : f32
      %91 = vector.broadcast %cst_59 : f32 to vector<6x128xf32>
      %92 = arith.mulf %91, %90 : vector<6x128xf32>
      %93 = arith.addf %87, %92 : vector<6x128xf32>
      %c126_i32 = arith.constant 126 : i32
      %94 = tpu.dynamic_rotate %79 by %c126_i32 dim 1 : vector<6x128xf32>, i32 -> vector<6x128xf32>
      %c120_i32 = arith.constant 120 : i32
      %95 = tpu.dynamic_rotate %79 by %c120_i32 dim 1 : vector<6x128xf32>, i32 -> vector<6x128xf32>
      %96 = arith.addf %94, %95 : vector<6x128xf32>
      %cst_60 = arith.constant 0.0360007733 : f32
      %97 = vector.broadcast %cst_60 : f32 to vector<6x128xf32>
      %98 = arith.mulf %97, %96 : vector<6x128xf32>
      %99 = arith.addf %93, %98 : vector<6x128xf32>
      %c125_i32 = arith.constant 125 : i32
      %100 = tpu.dynamic_rotate %79 by %c125_i32 dim 1 : vector<6x128xf32>, i32 -> vector<6x128xf32>
      %c121_i32 = arith.constant 121 : i32
      %101 = tpu.dynamic_rotate %79 by %c121_i32 dim 1 : vector<6x128xf32>, i32 -> vector<6x128xf32>
      %102 = arith.addf %100, %101 : vector<6x128xf32>
      %cst_61 = arith.constant 0.109360687 : f32
      %103 = vector.broadcast %cst_61 : f32 to vector<6x128xf32>
      %104 = arith.mulf %103, %102 : vector<6x128xf32>
      %105 = arith.addf %99, %104 : vector<6x128xf32>
      %c124_i32 = arith.constant 124 : i32
      %106 = tpu.dynamic_rotate %79 by %c124_i32 dim 1 : vector<6x128xf32>, i32 -> vector<6x128xf32>
      %c122_i32 = arith.constant 122 : i32
      %107 = tpu.dynamic_rotate %79 by %c122_i32 dim 1 : vector<6x128xf32>, i32 -> vector<6x128xf32>
      %108 = arith.addf %106, %107 : vector<6x128xf32>
      %cst_62 = arith.constant 0.213005543 : f32
      %109 = vector.broadcast %cst_62 : f32 to vector<6x128xf32>
      %110 = arith.mulf %109, %108 : vector<6x128xf32>
      %111 = arith.addf %105, %110 : vector<6x128xf32>
      %c0_i32_63 = arith.constant 0 : i32
      %c0_i32_64 = arith.constant 0 : i32
      %112 = tpu.memref_slice %arg2[%arg7, %c0_i32_63, %c0_i32_64] : memref<3x16x128xf32, #tpu.memory_space<vmem>> -> memref<1x16x128xf32, #tpu.memory_space<vmem>>
      %113 = tpu.memref_squeeze %112 : memref<1x16x128xf32, #tpu.memory_space<vmem>> -> memref<16x128xf32, #tpu.memory_space<vmem>>
      %c5_65 = arith.constant 5 : index
      %c0_66 = arith.constant 0 : index
      %114 = vector.load %113[%c5_65, %c0_66] : memref<16x128xf32, #tpu.memory_space<vmem>>, vector<6x128xf32>
      %cst_67 = arith.constant 0.266011715 : f32
      %115 = vector.broadcast %cst_67 : f32 to vector<6x128xf32>
      %116 = arith.mulf %115, %114 : vector<6x128xf32>
      %c0_i32_68 = arith.constant 0 : i32
      %c0_i32_69 = arith.constant 0 : i32
      %117 = tpu.memref_slice %arg2[%arg7, %c0_i32_68, %c0_i32_69] : memref<3x16x128xf32, #tpu.memory_space<vmem>> -> memref<1x16x128xf32, #tpu.memory_space<vmem>>
      %118 = tpu.memref_squeeze %117 : memref<1x16x128xf32, #tpu.memory_space<vmem>> -> memref<16x128xf32, #tpu.memory_space<vmem>>
      %c0_70 = arith.constant 0 : index
      %c0_71 = arith.constant 0 : index
      %119 = vector.load %118[%c0_70, %c0_71] : memref<16x128xf32, #tpu.memory_space<vmem>>, vector<6x128xf32>
      %c0_i32_72 = arith.constant 0 : i32
      %c0_i32_73 = arith.constant 0 : i32
      %120 = tpu.memref_slice %arg2[%arg7, %c0_i32_72, %c0_i32_73] : memref<3x16x128xf32, #tpu.memory_space<vmem>> -> memref<1x16x128xf32, #tpu.memory_space<vmem>>
      %121 = tpu.memref_squeeze %120 : memref<1x16x128xf32, #tpu.memory_space<vmem>> -> memref<16x128xf32, #tpu.memory_space<vmem>>
      %c10_74 = arith.constant 10 : index
      %c0_75 = arith.constant 0 : index
      %122 = vector.load %121[%c10_74, %c0_75] : memref<16x128xf32, #tpu.memory_space<vmem>>, vector<6x128xf32>
      %123 = arith.addf %119, %122 : vector<6x128xf32>
      %cst_76 = arith.constant 0.00102838012 : f32
      %124 = vector.broadcast %cst_76 : f32 to vector<6x128xf32>
      %125 = arith.mulf %124, %123 : vector<6x128xf32>
      %126 = arith.addf %116, %125 : vector<6x128xf32>
      %c0_i32_77 = arith.constant 0 : i32
      %c0_i32_78 = arith.constant 0 : i32
      %127 = tpu.memref_slice %arg2[%arg7, %c0_i32_77, %c0_i32_78] : memref<3x16x128xf32, #tpu.memory_space<vmem>> -> memref<1x16x128xf32, #tpu.memory_space<vmem>>
      %128 = tpu.memref_squeeze %127 : memref<1x16x128xf32, #tpu.memory_space<vmem>> -> memref<16x128xf32, #tpu.memory_space<vmem>>
      %c1_79 = arith.constant 1 : index
      %c0_80 = arith.constant 0 : index
      %129 = vector.load %128[%c1_79, %c0_80] : memref<16x128xf32, #tpu.memory_space<vmem>>, vector<6x128xf32>
      %c0_i32_81 = arith.constant 0 : i32
      %c0_i32_82 = arith.constant 0 : i32
      %130 = tpu.memref_slice %arg2[%arg7, %c0_i32_81, %c0_i32_82] : memref<3x16x128xf32, #tpu.memory_space<vmem>> -> memref<1x16x128xf32, #tpu.memory_space<vmem>>
      %131 = tpu.memref_squeeze %130 : memref<1x16x128xf32, #tpu.memory_space<vmem>> -> memref<16x128xf32, #tpu.memory_space<vmem>>
      %c9_83 = arith.constant 9 : index
      %c0_84 = arith.constant 0 : index
      %132 = vector.load %131[%c9_83, %c0_84] : memref<16x128xf32, #tpu.memory_space<vmem>>, vector<6x128xf32>
      %133 = arith.addf %129, %132 : vector<6x128xf32>
      %cst_85 = arith.constant 0.00759875821 : f32
      %134 = vector.broadcast %cst_85 : f32 to vector<6x128xf32>
      %135 = arith.mulf %134, %133 : vector<6x128xf32>
      %136 = arith.addf %126, %135 : vector<6x128xf32>
      %c0_i32_86 = arith.constant 0 : i32
      %c0_i32_87 = arith.constant 0 : i32
      %137 = tpu.memref_slice %arg2[%arg7, %c0_i32_86, %c0_i32_87] : memref<3x16x128xf32, #tpu.memory_space<vmem>> -> memref<1x16x128xf32, #tpu.memory_space<vmem>>
      %138 = tpu.memref_squeeze %137 : memref<1x16x128xf32, #tpu.memory_space<vmem>> -> memref<16x128xf32, #tpu.memory_space<vmem>>
      %c2_88 = arith.constant 2 : index
      %c0_89 = arith.constant 0 : index
      %139 = vector.load %138[%c2_88, %c0_89] : memref<16x128xf32, #tpu.memory_space<vmem>>, vector<6x128xf32>
      %c0_i32_90 = arith.constant 0 : i32
      %c0_i32_91 = arith.constant 0 : i32
      %140 = tpu.memref_slice %arg2[%arg7, %c0_i32_90, %c0_i32_91] : memref<3x16x128xf32, #tpu.memory_space<vmem>> -> memref<1x16x128xf32, #tpu.memory_space<vmem>>
      %141 = tpu.memref_squeeze %140 : memref<1x16x128xf32, #tpu.memory_space<vmem>> -> memref<16x128xf32, #tpu.memory_space<vmem>>
      %c8_92 = arith.constant 8 : index
      %c0_93 = arith.constant 0 : index
      %142 = vector.load %141[%c8_92, %c0_93] : memref<16x128xf32, #tpu.memory_space<vmem>>, vector<6x128xf32>
      %143 = arith.addf %139, %142 : vector<6x128xf32>
      %cst_94 = arith.constant 0.0360007733 : f32
      %144 = vector.broadcast %cst_94 : f32 to vector<6x128xf32>
      %145 = arith.mulf %144, %143 : vector<6x128xf32>
      %146 = arith.addf %136, %145 : vector<6x128xf32>
      %c0_i32_95 = arith.constant 0 : i32
      %c0_i32_96 = arith.constant 0 : i32
      %147 = tpu.memref_slice %arg2[%arg7, %c0_i32_95, %c0_i32_96] : memref<3x16x128xf32, #tpu.memory_space<vmem>> -> memref<1x16x128xf32, #tpu.memory_space<vmem>>
      %148 = tpu.memref_squeeze %147 : memref<1x16x128xf32, #tpu.memory_space<vmem>> -> memref<16x128xf32, #tpu.memory_space<vmem>>
      %c3_97 = arith.constant 3 : index
      %c0_98 = arith.constant 0 : index
      %149 = vector.load %148[%c3_97, %c0_98] : memref<16x128xf32, #tpu.memory_space<vmem>>, vector<6x128xf32>
      %c0_i32_99 = arith.constant 0 : i32
      %c0_i32_100 = arith.constant 0 : i32
      %150 = tpu.memref_slice %arg2[%arg7, %c0_i32_99, %c0_i32_100] : memref<3x16x128xf32, #tpu.memory_space<vmem>> -> memref<1x16x128xf32, #tpu.memory_space<vmem>>
      %151 = tpu.memref_squeeze %150 : memref<1x16x128xf32, #tpu.memory_space<vmem>> -> memref<16x128xf32, #tpu.memory_space<vmem>>
      %c7_101 = arith.constant 7 : index
      %c0_102 = arith.constant 0 : index
      %152 = vector.load %151[%c7_101, %c0_102] : memref<16x128xf32, #tpu.memory_space<vmem>>, vector<6x128xf32>
      %153 = arith.addf %149, %152 : vector<6x128xf32>
      %cst_103 = arith.constant 0.109360687 : f32
      %154 = vector.broadcast %cst_103 : f32 to vector<6x128xf32>
      %155 = arith.mulf %154, %153 : vector<6x128xf32>
      %156 = arith.addf %146, %155 : vector<6x128xf32>
      %c0_i32_104 = arith.constant 0 : i32
      %c0_i32_105 = arith.constant 0 : i32
      %157 = tpu.memref_slice %arg2[%arg7, %c0_i32_104, %c0_i32_105] : memref<3x16x128xf32, #tpu.memory_space<vmem>> -> memref<1x16x128xf32, #tpu.memory_space<vmem>>
      %158 = tpu.memref_squeeze %157 : memref<1x16x128xf32, #tpu.memory_space<vmem>> -> memref<16x128xf32, #tpu.memory_space<vmem>>
      %c4_106 = arith.constant 4 : index
      %c0_107 = arith.constant 0 : index
      %159 = vector.load %158[%c4_106, %c0_107] : memref<16x128xf32, #tpu.memory_space<vmem>>, vector<6x128xf32>
      %c0_i32_108 = arith.constant 0 : i32
      %c0_i32_109 = arith.constant 0 : i32
      %160 = tpu.memref_slice %arg2[%arg7, %c0_i32_108, %c0_i32_109] : memref<3x16x128xf32, #tpu.memory_space<vmem>> -> memref<1x16x128xf32, #tpu.memory_space<vmem>>
      %161 = tpu.memref_squeeze %160 : memref<1x16x128xf32, #tpu.memory_space<vmem>> -> memref<16x128xf32, #tpu.memory_space<vmem>>
      %c6_110 = arith.constant 6 : index
      %c0_111 = arith.constant 0 : index
      %162 = vector.load %161[%c6_110, %c0_111] : memref<16x128xf32, #tpu.memory_space<vmem>>, vector<6x128xf32>
      %163 = arith.addf %159, %162 : vector<6x128xf32>
      %cst_112 = arith.constant 0.213005543 : f32
      %164 = vector.broadcast %cst_112 : f32 to vector<6x128xf32>
      %165 = arith.mulf %164, %163 : vector<6x128xf32>
      %166 = arith.addf %156, %165 : vector<6x128xf32>
      %c123_i32_113 = arith.constant 123 : i32
      %167 = tpu.dynamic_rotate %166 by %c123_i32_113 dim 1 : vector<6x128xf32>, i32 -> vector<6x128xf32>
      %cst_114 = arith.constant 0.266011715 : f32
      %168 = vector.broadcast %cst_114 : f32 to vector<6x128xf32>
      %169 = arith.mulf %168, %167 : vector<6x128xf32>
      %c118_i32_115 = arith.constant 118 : i32
      %170 = tpu.dynamic_rotate %166 by %c118_i32_115 dim 1 : vector<6x128xf32>, i32 -> vector<6x128xf32>
      %171 = arith.addf %166, %170 : vector<6x128xf32>
      %cst_116 = arith.constant 0.00102838012 : f32
      %172 = vector.broadcast %cst_116 : f32 to vector<6x128xf32>
      %173 = arith.mulf %172, %171 : vector<6x128xf32>
      %174 = arith.addf %169, %173 : vector<6x128xf32>
      %c127_i32_117 = arith.constant 127 : i32
      %175 = tpu.dynamic_rotate %166 by %c127_i32_117 dim 1 : vector<6x128xf32>, i32 -> vector<6x128xf32>
      %c119_i32_118 = arith.constant 119 : i32
      %176 = tpu.dynamic_rotate %166 by %c119_i32_118 dim 1 : vector<6x128xf32>, i32 -> vector<6x128xf32>
      %177 = arith.addf %175, %176 : vector<6x128xf32>
      %cst_119 = arith.constant 0.00759875821 : f32
      %178 = vector.broadcast %cst_119 : f32 to vector<6x128xf32>
      %179 = arith.mulf %178, %177 : vector<6x128xf32>
      %180 = arith.addf %174, %179 : vector<6x128xf32>
      %c126_i32_120 = arith.constant 126 : i32
      %181 = tpu.dynamic_rotate %166 by %c126_i32_120 dim 1 : vector<6x128xf32>, i32 -> vector<6x128xf32>
      %c120_i32_121 = arith.constant 120 : i32
      %182 = tpu.dynamic_rotate %166 by %c120_i32_121 dim 1 : vector<6x128xf32>, i32 -> vector<6x128xf32>
      %183 = arith.addf %181, %182 : vector<6x128xf32>
      %cst_122 = arith.constant 0.0360007733 : f32
      %184 = vector.broadcast %cst_122 : f32 to vector<6x128xf32>
      %185 = arith.mulf %184, %183 : vector<6x128xf32>
      %186 = arith.addf %180, %185 : vector<6x128xf32>
      %c125_i32_123 = arith.constant 125 : i32
      %187 = tpu.dynamic_rotate %166 by %c125_i32_123 dim 1 : vector<6x128xf32>, i32 -> vector<6x128xf32>
      %c121_i32_124 = arith.constant 121 : i32
      %188 = tpu.dynamic_rotate %166 by %c121_i32_124 dim 1 : vector<6x128xf32>, i32 -> vector<6x128xf32>
      %189 = arith.addf %187, %188 : vector<6x128xf32>
      %cst_125 = arith.constant 0.109360687 : f32
      %190 = vector.broadcast %cst_125 : f32 to vector<6x128xf32>
      %191 = arith.mulf %190, %189 : vector<6x128xf32>
      %192 = arith.addf %186, %191 : vector<6x128xf32>
      %c124_i32_126 = arith.constant 124 : i32
      %193 = tpu.dynamic_rotate %166 by %c124_i32_126 dim 1 : vector<6x128xf32>, i32 -> vector<6x128xf32>
      %c122_i32_127 = arith.constant 122 : i32
      %194 = tpu.dynamic_rotate %166 by %c122_i32_127 dim 1 : vector<6x128xf32>, i32 -> vector<6x128xf32>
      %195 = arith.addf %193, %194 : vector<6x128xf32>
      %cst_128 = arith.constant 0.213005543 : f32
      %196 = vector.broadcast %cst_128 : f32 to vector<6x128xf32>
      %197 = arith.mulf %196, %195 : vector<6x128xf32>
      %198 = arith.addf %192, %197 : vector<6x128xf32>
      %c5_129 = arith.constant 5 : index
      %c0_130 = arith.constant 0 : index
      %199 = vector.load %arg4[%c5_129, %c0_130] : memref<16x128xf32, #tpu.memory_space<vmem>>, vector<6x128xf32>
      %cst_131 = arith.constant 0.266011715 : f32
      %200 = vector.broadcast %cst_131 : f32 to vector<6x128xf32>
      %201 = arith.mulf %200, %199 : vector<6x128xf32>
      %c0_132 = arith.constant 0 : index
      %c0_133 = arith.constant 0 : index
      %202 = vector.load %arg4[%c0_132, %c0_133] : memref<16x128xf32, #tpu.memory_space<vmem>>, vector<6x128xf32>
      %c10_134 = arith.constant 10 : index
      %c0_135 = arith.constant 0 : index
      %203 = vector.load %arg4[%c10_134, %c0_135] : memref<16x128xf32, #tpu.memory_space<vmem>>, vector<6x128xf32>
      %204 = arith.addf %202, %203 : vector<6x128xf32>
      %cst_136 = arith.constant 0.00102838012 : f32
      %205 = vector.broadcast %cst_136 : f32 to vector<6x128xf32>
      %206 = arith.mulf %205, %204 : vector<6x128xf32>
      %207 = arith.addf %201, %206 : vector<6x128xf32>
      %c1_137 = arith.constant 1 : index
      %c0_138 = arith.constant 0 : index
      %208 = vector.load %arg4[%c1_137, %c0_138] : memref<16x128xf32, #tpu.memory_space<vmem>>, vector<6x128xf32>
      %c9_139 = arith.constant 9 : index
      %c0_140 = arith.constant 0 : index
      %209 = vector.load %arg4[%c9_139, %c0_140] : memref<16x128xf32, #tpu.memory_space<vmem>>, vector<6x128xf32>
      %210 = arith.addf %208, %209 : vector<6x128xf32>
      %cst_141 = arith.constant 0.00759875821 : f32
      %211 = vector.broadcast %cst_141 : f32 to vector<6x128xf32>
      %212 = arith.mulf %211, %210 : vector<6x128xf32>
      %213 = arith.addf %207, %212 : vector<6x128xf32>
      %c2_142 = arith.constant 2 : index
      %c0_143 = arith.constant 0 : index
      %214 = vector.load %arg4[%c2_142, %c0_143] : memref<16x128xf32, #tpu.memory_space<vmem>>, vector<6x128xf32>
      %c8_144 = arith.constant 8 : index
      %c0_145 = arith.constant 0 : index
      %215 = vector.load %arg4[%c8_144, %c0_145] : memref<16x128xf32, #tpu.memory_space<vmem>>, vector<6x128xf32>
      %216 = arith.addf %214, %215 : vector<6x128xf32>
      %cst_146 = arith.constant 0.0360007733 : f32
      %217 = vector.broadcast %cst_146 : f32 to vector<6x128xf32>
      %218 = arith.mulf %217, %216 : vector<6x128xf32>
      %219 = arith.addf %213, %218 : vector<6x128xf32>
      %c3_147 = arith.constant 3 : index
      %c0_148 = arith.constant 0 : index
      %220 = vector.load %arg4[%c3_147, %c0_148] : memref<16x128xf32, #tpu.memory_space<vmem>>, vector<6x128xf32>
      %c7_149 = arith.constant 7 : index
      %c0_150 = arith.constant 0 : index
      %221 = vector.load %arg4[%c7_149, %c0_150] : memref<16x128xf32, #tpu.memory_space<vmem>>, vector<6x128xf32>
      %222 = arith.addf %220, %221 : vector<6x128xf32>
      %cst_151 = arith.constant 0.109360687 : f32
      %223 = vector.broadcast %cst_151 : f32 to vector<6x128xf32>
      %224 = arith.mulf %223, %222 : vector<6x128xf32>
      %225 = arith.addf %219, %224 : vector<6x128xf32>
      %c4_152 = arith.constant 4 : index
      %c0_153 = arith.constant 0 : index
      %226 = vector.load %arg4[%c4_152, %c0_153] : memref<16x128xf32, #tpu.memory_space<vmem>>, vector<6x128xf32>
      %c6_154 = arith.constant 6 : index
      %c0_155 = arith.constant 0 : index
      %227 = vector.load %arg4[%c6_154, %c0_155] : memref<16x128xf32, #tpu.memory_space<vmem>>, vector<6x128xf32>
      %228 = arith.addf %226, %227 : vector<6x128xf32>
      %cst_156 = arith.constant 0.213005543 : f32
      %229 = vector.broadcast %cst_156 : f32 to vector<6x128xf32>
      %230 = arith.mulf %229, %228 : vector<6x128xf32>
      %231 = arith.addf %225, %230 : vector<6x128xf32>
      %c123_i32_157 = arith.constant 123 : i32
      %232 = tpu.dynamic_rotate %231 by %c123_i32_157 dim 1 : vector<6x128xf32>, i32 -> vector<6x128xf32>
      %cst_158 = arith.constant 0.266011715 : f32
      %233 = vector.broadcast %cst_158 : f32 to vector<6x128xf32>
      %234 = arith.mulf %233, %232 : vector<6x128xf32>
      %c118_i32_159 = arith.constant 118 : i32
      %235 = tpu.dynamic_rotate %231 by %c118_i32_159 dim 1 : vector<6x128xf32>, i32 -> vector<6x128xf32>
      %236 = arith.addf %231, %235 : vector<6x128xf32>
      %cst_160 = arith.constant 0.00102838012 : f32
      %237 = vector.broadcast %cst_160 : f32 to vector<6x128xf32>
      %238 = arith.mulf %237, %236 : vector<6x128xf32>
      %239 = arith.addf %234, %238 : vector<6x128xf32>
      %c127_i32_161 = arith.constant 127 : i32
      %240 = tpu.dynamic_rotate %231 by %c127_i32_161 dim 1 : vector<6x128xf32>, i32 -> vector<6x128xf32>
      %c119_i32_162 = arith.constant 119 : i32
      %241 = tpu.dynamic_rotate %231 by %c119_i32_162 dim 1 : vector<6x128xf32>, i32 -> vector<6x128xf32>
      %242 = arith.addf %240, %241 : vector<6x128xf32>
      %cst_163 = arith.constant 0.00759875821 : f32
      %243 = vector.broadcast %cst_163 : f32 to vector<6x128xf32>
      %244 = arith.mulf %243, %242 : vector<6x128xf32>
      %245 = arith.addf %239, %244 : vector<6x128xf32>
      %c126_i32_164 = arith.constant 126 : i32
      %246 = tpu.dynamic_rotate %231 by %c126_i32_164 dim 1 : vector<6x128xf32>, i32 -> vector<6x128xf32>
      %c120_i32_165 = arith.constant 120 : i32
      %247 = tpu.dynamic_rotate %231 by %c120_i32_165 dim 1 : vector<6x128xf32>, i32 -> vector<6x128xf32>
      %248 = arith.addf %246, %247 : vector<6x128xf32>
      %cst_166 = arith.constant 0.0360007733 : f32
      %249 = vector.broadcast %cst_166 : f32 to vector<6x128xf32>
      %250 = arith.mulf %249, %248 : vector<6x128xf32>
      %251 = arith.addf %245, %250 : vector<6x128xf32>
      %c125_i32_167 = arith.constant 125 : i32
      %252 = tpu.dynamic_rotate %231 by %c125_i32_167 dim 1 : vector<6x128xf32>, i32 -> vector<6x128xf32>
      %c121_i32_168 = arith.constant 121 : i32
      %253 = tpu.dynamic_rotate %231 by %c121_i32_168 dim 1 : vector<6x128xf32>, i32 -> vector<6x128xf32>
      %254 = arith.addf %252, %253 : vector<6x128xf32>
      %cst_169 = arith.constant 0.109360687 : f32
      %255 = vector.broadcast %cst_169 : f32 to vector<6x128xf32>
      %256 = arith.mulf %255, %254 : vector<6x128xf32>
      %257 = arith.addf %251, %256 : vector<6x128xf32>
      %c124_i32_170 = arith.constant 124 : i32
      %258 = tpu.dynamic_rotate %231 by %c124_i32_170 dim 1 : vector<6x128xf32>, i32 -> vector<6x128xf32>
      %c122_i32_171 = arith.constant 122 : i32
      %259 = tpu.dynamic_rotate %231 by %c122_i32_171 dim 1 : vector<6x128xf32>, i32 -> vector<6x128xf32>
      %260 = arith.addf %258, %259 : vector<6x128xf32>
      %cst_172 = arith.constant 0.213005543 : f32
      %261 = vector.broadcast %cst_172 : f32 to vector<6x128xf32>
      %262 = arith.mulf %261, %260 : vector<6x128xf32>
      %263 = arith.addf %257, %262 : vector<6x128xf32>
      %c5_173 = arith.constant 5 : index
      %c0_174 = arith.constant 0 : index
      %264 = vector.load %arg5[%c5_173, %c0_174] : memref<16x128xf32, #tpu.memory_space<vmem>>, vector<6x128xf32>
      %cst_175 = arith.constant 0.266011715 : f32
      %265 = vector.broadcast %cst_175 : f32 to vector<6x128xf32>
      %266 = arith.mulf %265, %264 : vector<6x128xf32>
      %c0_176 = arith.constant 0 : index
      %c0_177 = arith.constant 0 : index
      %267 = vector.load %arg5[%c0_176, %c0_177] : memref<16x128xf32, #tpu.memory_space<vmem>>, vector<6x128xf32>
      %c10_178 = arith.constant 10 : index
      %c0_179 = arith.constant 0 : index
      %268 = vector.load %arg5[%c10_178, %c0_179] : memref<16x128xf32, #tpu.memory_space<vmem>>, vector<6x128xf32>
      %269 = arith.addf %267, %268 : vector<6x128xf32>
      %cst_180 = arith.constant 0.00102838012 : f32
      %270 = vector.broadcast %cst_180 : f32 to vector<6x128xf32>
      %271 = arith.mulf %270, %269 : vector<6x128xf32>
      %272 = arith.addf %266, %271 : vector<6x128xf32>
      %c1_181 = arith.constant 1 : index
      %c0_182 = arith.constant 0 : index
      %273 = vector.load %arg5[%c1_181, %c0_182] : memref<16x128xf32, #tpu.memory_space<vmem>>, vector<6x128xf32>
      %c9_183 = arith.constant 9 : index
      %c0_184 = arith.constant 0 : index
      %274 = vector.load %arg5[%c9_183, %c0_184] : memref<16x128xf32, #tpu.memory_space<vmem>>, vector<6x128xf32>
      %275 = arith.addf %273, %274 : vector<6x128xf32>
      %cst_185 = arith.constant 0.00759875821 : f32
      %276 = vector.broadcast %cst_185 : f32 to vector<6x128xf32>
      %277 = arith.mulf %276, %275 : vector<6x128xf32>
      %278 = arith.addf %272, %277 : vector<6x128xf32>
      %c2_186 = arith.constant 2 : index
      %c0_187 = arith.constant 0 : index
      %279 = vector.load %arg5[%c2_186, %c0_187] : memref<16x128xf32, #tpu.memory_space<vmem>>, vector<6x128xf32>
      %c8_188 = arith.constant 8 : index
      %c0_189 = arith.constant 0 : index
      %280 = vector.load %arg5[%c8_188, %c0_189] : memref<16x128xf32, #tpu.memory_space<vmem>>, vector<6x128xf32>
      %281 = arith.addf %279, %280 : vector<6x128xf32>
      %cst_190 = arith.constant 0.0360007733 : f32
      %282 = vector.broadcast %cst_190 : f32 to vector<6x128xf32>
      %283 = arith.mulf %282, %281 : vector<6x128xf32>
      %284 = arith.addf %278, %283 : vector<6x128xf32>
      %c3_191 = arith.constant 3 : index
      %c0_192 = arith.constant 0 : index
      %285 = vector.load %arg5[%c3_191, %c0_192] : memref<16x128xf32, #tpu.memory_space<vmem>>, vector<6x128xf32>
      %c7_193 = arith.constant 7 : index
      %c0_194 = arith.constant 0 : index
      %286 = vector.load %arg5[%c7_193, %c0_194] : memref<16x128xf32, #tpu.memory_space<vmem>>, vector<6x128xf32>
      %287 = arith.addf %285, %286 : vector<6x128xf32>
      %cst_195 = arith.constant 0.109360687 : f32
      %288 = vector.broadcast %cst_195 : f32 to vector<6x128xf32>
      %289 = arith.mulf %288, %287 : vector<6x128xf32>
      %290 = arith.addf %284, %289 : vector<6x128xf32>
      %c4_196 = arith.constant 4 : index
      %c0_197 = arith.constant 0 : index
      %291 = vector.load %arg5[%c4_196, %c0_197] : memref<16x128xf32, #tpu.memory_space<vmem>>, vector<6x128xf32>
      %c6_198 = arith.constant 6 : index
      %c0_199 = arith.constant 0 : index
      %292 = vector.load %arg5[%c6_198, %c0_199] : memref<16x128xf32, #tpu.memory_space<vmem>>, vector<6x128xf32>
      %293 = arith.addf %291, %292 : vector<6x128xf32>
      %cst_200 = arith.constant 0.213005543 : f32
      %294 = vector.broadcast %cst_200 : f32 to vector<6x128xf32>
      %295 = arith.mulf %294, %293 : vector<6x128xf32>
      %296 = arith.addf %290, %295 : vector<6x128xf32>
      %c123_i32_201 = arith.constant 123 : i32
      %297 = tpu.dynamic_rotate %296 by %c123_i32_201 dim 1 : vector<6x128xf32>, i32 -> vector<6x128xf32>
      %cst_202 = arith.constant 0.266011715 : f32
      %298 = vector.broadcast %cst_202 : f32 to vector<6x128xf32>
      %299 = arith.mulf %298, %297 : vector<6x128xf32>
      %c118_i32_203 = arith.constant 118 : i32
      %300 = tpu.dynamic_rotate %296 by %c118_i32_203 dim 1 : vector<6x128xf32>, i32 -> vector<6x128xf32>
      %301 = arith.addf %296, %300 : vector<6x128xf32>
      %cst_204 = arith.constant 0.00102838012 : f32
      %302 = vector.broadcast %cst_204 : f32 to vector<6x128xf32>
      %303 = arith.mulf %302, %301 : vector<6x128xf32>
      %304 = arith.addf %299, %303 : vector<6x128xf32>
      %c127_i32_205 = arith.constant 127 : i32
      %305 = tpu.dynamic_rotate %296 by %c127_i32_205 dim 1 : vector<6x128xf32>, i32 -> vector<6x128xf32>
      %c119_i32_206 = arith.constant 119 : i32
      %306 = tpu.dynamic_rotate %296 by %c119_i32_206 dim 1 : vector<6x128xf32>, i32 -> vector<6x128xf32>
      %307 = arith.addf %305, %306 : vector<6x128xf32>
      %cst_207 = arith.constant 0.00759875821 : f32
      %308 = vector.broadcast %cst_207 : f32 to vector<6x128xf32>
      %309 = arith.mulf %308, %307 : vector<6x128xf32>
      %310 = arith.addf %304, %309 : vector<6x128xf32>
      %c126_i32_208 = arith.constant 126 : i32
      %311 = tpu.dynamic_rotate %296 by %c126_i32_208 dim 1 : vector<6x128xf32>, i32 -> vector<6x128xf32>
      %c120_i32_209 = arith.constant 120 : i32
      %312 = tpu.dynamic_rotate %296 by %c120_i32_209 dim 1 : vector<6x128xf32>, i32 -> vector<6x128xf32>
      %313 = arith.addf %311, %312 : vector<6x128xf32>
      %cst_210 = arith.constant 0.0360007733 : f32
      %314 = vector.broadcast %cst_210 : f32 to vector<6x128xf32>
      %315 = arith.mulf %314, %313 : vector<6x128xf32>
      %316 = arith.addf %310, %315 : vector<6x128xf32>
      %c125_i32_211 = arith.constant 125 : i32
      %317 = tpu.dynamic_rotate %296 by %c125_i32_211 dim 1 : vector<6x128xf32>, i32 -> vector<6x128xf32>
      %c121_i32_212 = arith.constant 121 : i32
      %318 = tpu.dynamic_rotate %296 by %c121_i32_212 dim 1 : vector<6x128xf32>, i32 -> vector<6x128xf32>
      %319 = arith.addf %317, %318 : vector<6x128xf32>
      %cst_213 = arith.constant 0.109360687 : f32
      %320 = vector.broadcast %cst_213 : f32 to vector<6x128xf32>
      %321 = arith.mulf %320, %319 : vector<6x128xf32>
      %322 = arith.addf %316, %321 : vector<6x128xf32>
      %c124_i32_214 = arith.constant 124 : i32
      %323 = tpu.dynamic_rotate %296 by %c124_i32_214 dim 1 : vector<6x128xf32>, i32 -> vector<6x128xf32>
      %c122_i32_215 = arith.constant 122 : i32
      %324 = tpu.dynamic_rotate %296 by %c122_i32_215 dim 1 : vector<6x128xf32>, i32 -> vector<6x128xf32>
      %325 = arith.addf %323, %324 : vector<6x128xf32>
      %cst_216 = arith.constant 0.213005543 : f32
      %326 = vector.broadcast %cst_216 : f32 to vector<6x128xf32>
      %327 = arith.mulf %326, %325 : vector<6x128xf32>
      %328 = arith.addf %322, %327 : vector<6x128xf32>
      %c5_217 = arith.constant 5 : index
      %c0_218 = arith.constant 0 : index
      %329 = vector.load %arg6[%c5_217, %c0_218] : memref<16x128xf32, #tpu.memory_space<vmem>>, vector<6x128xf32>
      %cst_219 = arith.constant 0.266011715 : f32
      %330 = vector.broadcast %cst_219 : f32 to vector<6x128xf32>
      %331 = arith.mulf %330, %329 : vector<6x128xf32>
      %c0_220 = arith.constant 0 : index
      %c0_221 = arith.constant 0 : index
      %332 = vector.load %arg6[%c0_220, %c0_221] : memref<16x128xf32, #tpu.memory_space<vmem>>, vector<6x128xf32>
      %c10_222 = arith.constant 10 : index
      %c0_223 = arith.constant 0 : index
      %333 = vector.load %arg6[%c10_222, %c0_223] : memref<16x128xf32, #tpu.memory_space<vmem>>, vector<6x128xf32>
      %334 = arith.addf %332, %333 : vector<6x128xf32>
      %cst_224 = arith.constant 0.00102838012 : f32
      %335 = vector.broadcast %cst_224 : f32 to vector<6x128xf32>
      %336 = arith.mulf %335, %334 : vector<6x128xf32>
      %337 = arith.addf %331, %336 : vector<6x128xf32>
      %c1_225 = arith.constant 1 : index
      %c0_226 = arith.constant 0 : index
      %338 = vector.load %arg6[%c1_225, %c0_226] : memref<16x128xf32, #tpu.memory_space<vmem>>, vector<6x128xf32>
      %c9_227 = arith.constant 9 : index
      %c0_228 = arith.constant 0 : index
      %339 = vector.load %arg6[%c9_227, %c0_228] : memref<16x128xf32, #tpu.memory_space<vmem>>, vector<6x128xf32>
      %340 = arith.addf %338, %339 : vector<6x128xf32>
      %cst_229 = arith.constant 0.00759875821 : f32
      %341 = vector.broadcast %cst_229 : f32 to vector<6x128xf32>
      %342 = arith.mulf %341, %340 : vector<6x128xf32>
      %343 = arith.addf %337, %342 : vector<6x128xf32>
      %c2_230 = arith.constant 2 : index
      %c0_231 = arith.constant 0 : index
      %344 = vector.load %arg6[%c2_230, %c0_231] : memref<16x128xf32, #tpu.memory_space<vmem>>, vector<6x128xf32>
      %c8_232 = arith.constant 8 : index
      %c0_233 = arith.constant 0 : index
      %345 = vector.load %arg6[%c8_232, %c0_233] : memref<16x128xf32, #tpu.memory_space<vmem>>, vector<6x128xf32>
      %346 = arith.addf %344, %345 : vector<6x128xf32>
      %cst_234 = arith.constant 0.0360007733 : f32
      %347 = vector.broadcast %cst_234 : f32 to vector<6x128xf32>
      %348 = arith.mulf %347, %346 : vector<6x128xf32>
      %349 = arith.addf %343, %348 : vector<6x128xf32>
      %c3_235 = arith.constant 3 : index
      %c0_236 = arith.constant 0 : index
      %350 = vector.load %arg6[%c3_235, %c0_236] : memref<16x128xf32, #tpu.memory_space<vmem>>, vector<6x128xf32>
      %c7_237 = arith.constant 7 : index
      %c0_238 = arith.constant 0 : index
      %351 = vector.load %arg6[%c7_237, %c0_238] : memref<16x128xf32, #tpu.memory_space<vmem>>, vector<6x128xf32>
      %352 = arith.addf %350, %351 : vector<6x128xf32>
      %cst_239 = arith.constant 0.109360687 : f32
      %353 = vector.broadcast %cst_239 : f32 to vector<6x128xf32>
      %354 = arith.mulf %353, %352 : vector<6x128xf32>
      %355 = arith.addf %349, %354 : vector<6x128xf32>
      %c4_240 = arith.constant 4 : index
      %c0_241 = arith.constant 0 : index
      %356 = vector.load %arg6[%c4_240, %c0_241] : memref<16x128xf32, #tpu.memory_space<vmem>>, vector<6x128xf32>
      %c6_242 = arith.constant 6 : index
      %c0_243 = arith.constant 0 : index
      %357 = vector.load %arg6[%c6_242, %c0_243] : memref<16x128xf32, #tpu.memory_space<vmem>>, vector<6x128xf32>
      %358 = arith.addf %356, %357 : vector<6x128xf32>
      %cst_244 = arith.constant 0.213005543 : f32
      %359 = vector.broadcast %cst_244 : f32 to vector<6x128xf32>
      %360 = arith.mulf %359, %358 : vector<6x128xf32>
      %361 = arith.addf %355, %360 : vector<6x128xf32>
      %c123_i32_245 = arith.constant 123 : i32
      %362 = tpu.dynamic_rotate %361 by %c123_i32_245 dim 1 : vector<6x128xf32>, i32 -> vector<6x128xf32>
      %cst_246 = arith.constant 0.266011715 : f32
      %363 = vector.broadcast %cst_246 : f32 to vector<6x128xf32>
      %364 = arith.mulf %363, %362 : vector<6x128xf32>
      %c118_i32_247 = arith.constant 118 : i32
      %365 = tpu.dynamic_rotate %361 by %c118_i32_247 dim 1 : vector<6x128xf32>, i32 -> vector<6x128xf32>
      %366 = arith.addf %361, %365 : vector<6x128xf32>
      %cst_248 = arith.constant 0.00102838012 : f32
      %367 = vector.broadcast %cst_248 : f32 to vector<6x128xf32>
      %368 = arith.mulf %367, %366 : vector<6x128xf32>
      %369 = arith.addf %364, %368 : vector<6x128xf32>
      %c127_i32_249 = arith.constant 127 : i32
      %370 = tpu.dynamic_rotate %361 by %c127_i32_249 dim 1 : vector<6x128xf32>, i32 -> vector<6x128xf32>
      %c119_i32_250 = arith.constant 119 : i32
      %371 = tpu.dynamic_rotate %361 by %c119_i32_250 dim 1 : vector<6x128xf32>, i32 -> vector<6x128xf32>
      %372 = arith.addf %370, %371 : vector<6x128xf32>
      %cst_251 = arith.constant 0.00759875821 : f32
      %373 = vector.broadcast %cst_251 : f32 to vector<6x128xf32>
      %374 = arith.mulf %373, %372 : vector<6x128xf32>
      %375 = arith.addf %369, %374 : vector<6x128xf32>
      %c126_i32_252 = arith.constant 126 : i32
      %376 = tpu.dynamic_rotate %361 by %c126_i32_252 dim 1 : vector<6x128xf32>, i32 -> vector<6x128xf32>
      %c120_i32_253 = arith.constant 120 : i32
      %377 = tpu.dynamic_rotate %361 by %c120_i32_253 dim 1 : vector<6x128xf32>, i32 -> vector<6x128xf32>
      %378 = arith.addf %376, %377 : vector<6x128xf32>
      %cst_254 = arith.constant 0.0360007733 : f32
      %379 = vector.broadcast %cst_254 : f32 to vector<6x128xf32>
      %380 = arith.mulf %379, %378 : vector<6x128xf32>
      %381 = arith.addf %375, %380 : vector<6x128xf32>
      %c125_i32_255 = arith.constant 125 : i32
      %382 = tpu.dynamic_rotate %361 by %c125_i32_255 dim 1 : vector<6x128xf32>, i32 -> vector<6x128xf32>
      %c121_i32_256 = arith.constant 121 : i32
      %383 = tpu.dynamic_rotate %361 by %c121_i32_256 dim 1 : vector<6x128xf32>, i32 -> vector<6x128xf32>
      %384 = arith.addf %382, %383 : vector<6x128xf32>
      %cst_257 = arith.constant 0.109360687 : f32
      %385 = vector.broadcast %cst_257 : f32 to vector<6x128xf32>
      %386 = arith.mulf %385, %384 : vector<6x128xf32>
      %387 = arith.addf %381, %386 : vector<6x128xf32>
      %c124_i32_258 = arith.constant 124 : i32
      %388 = tpu.dynamic_rotate %361 by %c124_i32_258 dim 1 : vector<6x128xf32>, i32 -> vector<6x128xf32>
      %c122_i32_259 = arith.constant 122 : i32
      %389 = tpu.dynamic_rotate %361 by %c122_i32_259 dim 1 : vector<6x128xf32>, i32 -> vector<6x128xf32>
      %390 = arith.addf %388, %389 : vector<6x128xf32>
      %cst_260 = arith.constant 0.213005543 : f32
      %391 = vector.broadcast %cst_260 : f32 to vector<6x128xf32>
      %392 = arith.mulf %391, %390 : vector<6x128xf32>
      %393 = arith.addf %387, %392 : vector<6x128xf32>
      %394 = arith.mulf %111, %111 : vector<6x128xf32>
      %395 = arith.mulf %198, %198 : vector<6x128xf32>
      %396 = arith.mulf %111, %198 : vector<6x128xf32>
      %397 = arith.subf %263, %394 : vector<6x128xf32>
      %398 = arith.subf %328, %395 : vector<6x128xf32>
      %399 = arith.subf %393, %396 : vector<6x128xf32>
      %cst_261 = arith.constant 2.000000e+00 : f32
      %400 = vector.broadcast %cst_261 : f32 to vector<6x128xf32>
      %401 = arith.mulf %400, %396 : vector<6x128xf32>
      %cst_262 = arith.constant 4.000000e-08 : f32
      %402 = vector.broadcast %cst_262 : f32 to vector<6x128xf32>
      %403 = arith.addf %401, %402 : vector<6x128xf32>
      %cst_263 = arith.constant 2.000000e+00 : f32
      %404 = vector.broadcast %cst_263 : f32 to vector<6x128xf32>
      %405 = arith.mulf %404, %399 : vector<6x128xf32>
      %cst_264 = arith.constant 4.000000e-06 : f32
      %406 = vector.broadcast %cst_264 : f32 to vector<6x128xf32>
      %407 = arith.addf %405, %406 : vector<6x128xf32>
      %408 = arith.mulf %403, %407 : vector<6x128xf32>
      %409 = arith.addf %394, %395 : vector<6x128xf32>
      %cst_265 = arith.constant 4.000000e-08 : f32
      %410 = vector.broadcast %cst_265 : f32 to vector<6x128xf32>
      %411 = arith.addf %409, %410 : vector<6x128xf32>
      %412 = arith.addf %397, %398 : vector<6x128xf32>
      %cst_266 = arith.constant 4.000000e-06 : f32
      %413 = vector.broadcast %cst_266 : f32 to vector<6x128xf32>
      %414 = arith.addf %412, %413 : vector<6x128xf32>
      %415 = arith.mulf %411, %414 : vector<6x128xf32>
      %416 = tpu.reciprocal %415 {approx = true} : vector<6x128xf32> -> vector<6x128xf32>
      %417 = arith.mulf %415, %416 : vector<6x128xf32>
      %cst_267 = arith.constant 2.000000e+00 : f32
      %418 = vector.broadcast %cst_267 : f32 to vector<6x128xf32>
      %419 = arith.subf %418, %417 : vector<6x128xf32>
      %420 = arith.mulf %416, %419 : vector<6x128xf32>
      %421 = arith.mulf %408, %420 : vector<6x128xf32>
      %cst_268 = arith.constant 1.000000e+00 : f32
      %422 = vector.broadcast %cst_268 : f32 to vector<6x128xf32>
      %423 = arith.subf %422, %421 : vector<6x128xf32>
      %424 = arith.index_cast %arg7 : i32 to index
      %c0_269 = arith.constant 0 : index
      %c0_270 = arith.constant 0 : index
      %425 = vector.load %arg3[%424, %c0_269, %c0_270] : memref<3x6x128xf32, #tpu.memory_space<vmem>>, vector<1x6x128xf32>
      %426 = vector.shape_cast %425 : vector<1x6x128xf32> to vector<6x128xf32>
      %427 = vector.shape_cast %423 : vector<6x128xf32> to vector<1x6x128xf32>
      tpu.vector_store %arg3[%424, %c0_269, %c0_270], %427 {strides = array<i32>} : memref<3x6x128xf32, #tpu.memory_space<vmem>>, vector<1x6x128xf32>,
    }
    %c3_i32_0 = arith.constant 3 : i32
    return
  }
  func.func @transform_0(%arg0: i32) -> (i32, i32, i32) {
    %c0_i32 = arith.constant 0 : i32
    %c0_i32_0 = arith.constant 0 : i32
    %c0_i32_1 = arith.constant 0 : i32
    return %arg0, %c0_i32, %c0_i32_0 : i32, i32, i32
  }
  func.func @transform_1(%arg0: i32) -> (i32, i32, i32) {
    %c0_i32 = arith.constant 0 : i32
    %c0_i32_0 = arith.constant 0 : i32
    %c0_i32_1 = arith.constant 0 : i32
    return %arg0, %c0_i32, %c0_i32_0 : i32, i32, i32
  }
  func.func @transform_2(%arg0: i32) -> (i32, i32, i32) {
    %c0_i32 = arith.constant 0 : i32
    %c0_i32_0 = arith.constant 0 : i32
    %c0_i32_1 = arith.constant 0 : i32
    return %arg0, %c0_i32, %c0_i32_0 : i32, i32, i32
  }
}

</mosaic_0001>

<bundles_post_ra>
// kernel: ssim_loss.1
= control target key start
LH: loop header
LB: loop body
LE: loop exit
PB: predicated region body
PF: predicated region fallthrough
CT: control target
= control target key end

     0   :  { %s708_s9 = smov 0   ;;  %s896_s0 = inlined_call_operand.vmem [shape: f32[6,16,128], index: 0, kind: input, shape index: {}]   ;;  %s897_s1 = inlined_call_operand.vmem [shape: f32[6,16,128], index: 1, kind: input, shape index: {}]   ;;  %s898_s2 = inlined_call_operand.vmem [shape: f32[6,6,128], index: 2, kind: output, shape index: {}]  }
   0x1 LB: > { %s623_s10 = sadd.s32 4294967295, %s677_s9   ;;  %p627_p0 = scmp.ge.s32.totalorder %s677_s9, 1  ;;  %s677_s9 = sphi %s708_s9, %s12_s9  }
   0x2   : > { %p126_p1 = scmp.lt.s32.totalorder %s677_s9, 3 }
   0x4   : > { %p127_p2 = pnand %p627_p0, %p126_p1 }
   0x5   : > { %s155_s11 = smul.u32 (!%p127_p2), 3, %s623_s10  ;;  %s731_s23 = smov (!%p127_p2), 0  }
   0x6   : > { %130 = sbr.rel (%p127_p2) target bundleno = 271 (0x10f), region = 28 }
   0x7   : > { %p156_p3 = scmp.lt.s32.totalorder (!%p127_p2), %s155_s11, 5 }
   0xd   : > { %s900_s11 = smov (!%p156_p3, %s155_s11), 5 }
   0xe   : > { %s637_s12 = sshll.u32 %s900_s11, 4  ;;  %s632_s13 = sshll.u32 %s900_s11, 3 }
   0xf   : > { %s719_s16 = scalar_lea.vmem %s896_s0, %s637_s12  ;;  %s724_s19 = scalar_lea.vmem %s897_s1, %s637_s12 }
  0x10   : > { %s729_s22 = scalar_lea.vmem %s898_s2, %s632_s13 }
  0x11 LB: >> { %s633_s24 = sshll.u32 %s681_s23, 4  ;;  %s683_s27 = smov 123   ;;  %s681_s23 = sphi %s731_s23, %s180_s23  }
  0x12   : >> { %s738_s25 = scalar_lea.vmem %s719_s16, %s633_s24  ;;  %s749_s26 = scalar_lea.vmem %s724_s19, %s633_s24 }
  0x13   : >> { %v204_v0 = vld [vmem:[%s738_s25 + $0x5] sm:$0x3f]  ;;  %s684_s28 = smov 118   ;;  %s685_s29 = smov 127  }
  0x14   : >> { %v206_v1 = vld [vmem:[%s738_s25] sm:$0x3f]  ;;  %v207_v2 = vld [vmem:[%s738_s25 + $0xa] sm:$0x3f]  ;;  %v205_v3 = vmul.f32 0.26601171, %v204_v0 }
  0x15   : >> { %v208_v4 = vadd.f32 %v207_v2, %v206_v1  ;;  %v211_v5 = vld [vmem:[%s738_s25 + $0x1] sm:$0x3f]  ;;  %v212_v6 = vld [vmem:[%s738_s25 + $0x9] sm:$0x3f]  ;;  %s686_s30 = smov 119   ;;  %s687_s3 = smov 120  }
  0x16   : >> { %v213_v7 = vadd.f32 %v212_v6, %v211_v5  ;;  %v216_v8 = vld [vmem:[%s738_s25 + $0x2] sm:$0x3f]  ;;  %v217_v9 = vld [vmem:[%s738_s25 + $0x8] sm:$0x3f]  ;;  %s688_s4 = smov 126   ;;  %s689_s5 = smov 121  }
  0x17   : >> { %v221_v10 = vld [vmem:[%s738_s25 + $0x3] sm:$0x3f]  ;;  %v209_v11 = vmul.f32 0.0010283801, %v208_v4  ;;  %v218_v12 = vadd.f32 %v217_v9, %v216_v8  ;;  %v270_v25 = vld [vmem:[%s749_s26 + $0xa] sm:$0x3f] }
  0x18   : >> { %v222_v13 = vld [vmem:[%s738_s25 + $0x7] sm:$0x3f]  ;;  %v214_v15 = vmul.f32 0.007598758, %v213_v7  ;;  %v269_v23 = vld [vmem:[%s749_s26] sm:$0x3f] }
  0x19   : >> { %v226_v14 = vld [vmem:[%s738_s25 + $0x4] sm:$0x3f]  ;;  %v223_v16 = vadd.f32 %v222_v13, %v221_v10  ;;  %v210_v19 = vadd.f32 %v209_v11, %v205_v3  ;;  %v219_v20 = vmul.f32 0.036000773, %v218_v12  ;;  %v271_v29 = vadd.f32 %v270_v25, %v269_v23  ;;  %s690_s6 = smov 125   ;;  %s691_s7 = smov 122  }
  0x1a   : >> { %v227_v17 = vld [vmem:[%s738_s25 + $0x6] sm:$0x3f]  ;;  %s692_s8 = smov 124   ;;  %s634_s10 = sshll.u32 %s681_s23, 3 }
  0x1b   : >> { %v267_v18 = vld [vmem:[%s749_s26 + $0x5] sm:$0x3f]  ;;  %v228_v21 = vadd.f32 %v227_v17, %v226_v14  ;;  %v224_v24 = vmul.f32 0.10936069, %v223_v16  ;;  %v215_v27 = vadd.f32 %v214_v15, %v210_v19  ;;  %v272_v37 = vmul.f32 0.0010283801, %v271_v29  ;;  %s542_s11 = scalar_lea.vmem %s729_s22, %s634_s10 }
  0x1c   : >> { %v268_v22 = vmul.f32 0.26601171, %v267_v18  ;;  %v274_v26 = vld [vmem:[%s749_s26 + $0x1] sm:$0x3f]  ;;  %v275_v30 = vld [vmem:[%s749_s26 + $0x9] sm:$0x3f] }
  0x1d   : >> { %v229_v28 = vmul.f32 0.21300554, %v228_v21  ;;  %v279_v31 = vld [vmem:[%s749_s26 + $0x2] sm:$0x3f]  ;;  %v276_v32 = vadd.f32 %v275_v30, %v274_v26  ;;  %v280_v33 = vld [vmem:[%s749_s26 + $0x8] sm:$0x3f]  ;;  %v220_v36 = vadd.f32 %v219_v20, %v215_v27 }
  0x1e   : >> { %v284_v34 = vld [vmem:[%s749_s26 + $0x3] sm:$0x3f]  ;;  %v281_v38 = vadd.f32 %v280_v33, %v279_v31  ;;  %v273_v46 = vadd.f32 %v272_v37, %v268_v22  ;;  %s180_s23 = sadd.s32 1, %s681_s23  }
  0x1f   : >> { %v285_v35 = vld [vmem:[%s749_s26 + $0x7] sm:$0x3f]  ;;  %v277_v42 = vmul.f32 0.007598758, %v276_v32  ;;  %v225_v45 = vadd.f32 %v224_v24, %v220_v36  ;;  %p177_p4 = scmp.ge.s32.totalorder %s180_s23, 3  }
  0x20   : >> { %v286_v39 = vadd.f32 %v285_v35, %v284_v34  ;;  %v289_v40 = vld [vmem:[%s749_s26 + $0x4] sm:$0x3f]  ;;  %v282_v47 = vmul.f32 0.036000773, %v281_v38 }
  0x21   : >> { %v290_v41 = vld [vmem:[%s749_s26 + $0x6] sm:$0x3f]  ;;  %v769_v55 = vadd.f32 %v229_v28, %v225_v45  ;;  %v278_v56 = vadd.f32 %v277_v42, %v273_v46 }
  0x22   : >> { %v190_v43 = vld [vmem:[%s749_s26] sm:$0xff]  ;;  %v191_v44 = vld [vmem:[%s749_s26 + $0x8] sm:$0xff]  ;;  %v291_v48 = vadd.f32 %v290_v41, %v289_v40  ;;  %v287_v50 = vmul.f32 0.10936069, %v286_v39 }
  0x23   : >> { %v183_v49 = vld [vmem:[%s738_s25] sm:$0xff]  ;;  %v192_v51 = vmul.f32 %v190_v43, %v190_v43  ;;  %v193_v52 = vmul.f32 %v191_v44, %v191_v44  ;;  %v184_v53 = vld [vmem:[%s738_s25 + $0x8] sm:$0xff]  ;;  %231 = vrot.lane.b32.xlu1 %v769_v55, %s683_s27  ;;  %234 = vrot.lane.b32.xlu0 %v769_v55, %s684_s28  ;;  %v283_v60 = vadd.f32 %v282_v47, %v278_v56 }
  0x24   : >> { %v185_v54 = vmul.f32 %v183_v49, %v183_v49  ;;  %v186_v57 = vmul.f32 %v184_v53, %v184_v53  ;;  %v200_v58 = vmul.f32 %v190_v43, %v183_v49  ;;  %v201_v59 = vmul.f32 %v191_v44, %v184_v53 }
  0x25   : >> { %194 = vst [vmem:[#allocation3] sm:$0xff] %v192_v51  ;;  %195 = vst [vmem:[#allocation3 + $0x8] sm:$0xff] %v193_v52  ;;  %v292_v61 = vmul.f32 0.21300554, %v291_v48  ;;  %v288_v62 = vadd.f32 %v287_v50, %v283_v60 }
  0x26   : >> { %187 = vst [vmem:[#allocation2] sm:$0xff] %v185_v54  ;;  %188 = vst [vmem:[#allocation2 + $0x8] sm:$0xff] %v186_v57 }
  0x27   : >> { %202 = vst [vmem:[#allocation4] sm:$0xff] %v200_v58  ;;  %203 = vst [vmem:[#allocation4 + $0x8] sm:$0xff] %v201_v59  ;;  %239 = vrot.lane.b32.xlu1 %v769_v55, %s685_s29  ;;  %v777_v63 = vadd.f32 %v292_v61, %v288_v62 }
  0x29   : >> { %297 = vrot.lane.b32.xlu0 %v777_v63, %s684_s28 }
  0x2b   : >> { %294 = vrot.lane.b32.xlu1 %v777_v63, %s683_s27 }
  0x2c   : >> { %v393_v0 = vld [vmem:[#allocation3 + $0x5] sm:$0x3f] }
  0x2d   : >> { %v395_v1 = vld [vmem:[#allocation3] sm:$0x3f]  ;;  %v396_v2 = vld [vmem:[#allocation3 + $0xa] sm:$0x3f]  ;;  %v394_v3 = vmul.f32 0.26601171, %v393_v0  ;;  %241 = vrot.lane.b32.xlu0 %v769_v55, %s686_s30 }
  0x2e   : >> { %v397_v4 = vadd.f32 %v396_v2, %v395_v1  ;;  %v400_v5 = vld [vmem:[#allocation3 + $0x1] sm:$0x3f]  ;;  %v401_v6 = vld [vmem:[#allocation3 + $0x9] sm:$0x3f]  ;;  %v330_v18 = vld [vmem:[#allocation2 + $0x5] sm:$0x3f] }
  0x2f   : >> { %v402_v7 = vadd.f32 %v401_v6, %v400_v5  ;;  %v405_v8 = vld [vmem:[#allocation3 + $0x2] sm:$0x3f]  ;;  %v406_v9 = vld [vmem:[#allocation3 + $0x8] sm:$0x3f]  ;;  %v332_v21 = vld [vmem:[#allocation2] sm:$0x3f]  ;;  %304 = vrot.lane.b32.xlu1 %v777_v63, %s686_s30 }
  0x30   : >> { %v410_v10 = vld [vmem:[#allocation3 + $0x3] sm:$0x3f]  ;;  %v398_v11 = vmul.f32 0.0010283801, %v397_v4  ;;  %v407_v12 = vadd.f32 %v406_v9, %v405_v8  ;;  %v331_v23 = vmul.f32 0.26601171, %v330_v18 }
  0x31   : >> { %v411_v13 = vld [vmem:[#allocation3 + $0x7] sm:$0x3f]  ;;  %v403_v15 = vmul.f32 0.007598758, %v402_v7  ;;  %v333_v24 = vld [vmem:[#allocation2 + $0xa] sm:$0x3f]  ;;  %302 = vrot.lane.b32.xlu0 %v777_v63, %s685_s29 }
  0x32   : >> { %v415_v14 = vld [vmem:[#allocation3 + $0x4] sm:$0x3f]  ;;  %v412_v16 = vadd.f32 %v411_v13, %v410_v10  ;;  %v399_v19 = vadd.f32 %v398_v11, %v394_v3  ;;  %v408_v20 = vmul.f32 0.036000773, %v407_v12  ;;  %v337_v25 = vld [vmem:[#allocation2 + $0x1] sm:$0x3f]  ;;  %v334_v28 = vadd.f32 %v333_v24, %v332_v21 }
  0x33   : >> { %v416_v17 = vld [vmem:[#allocation3 + $0x6] sm:$0x3f]  ;;  %v338_v29 = vld [vmem:[#allocation2 + $0x9] sm:$0x3f]  ;;  %v342_v30 = vld [vmem:[#allocation2 + $0x2] sm:$0x3f]  ;;  %248 = vrot.lane.b32.xlu1 %v769_v55, %s687_s3 }
  0x34   : >> { %v417_v22 = vadd.f32 %v416_v17, %v415_v14  ;;  %v404_v26 = vadd.f32 %v403_v15, %v399_v19  ;;  %v413_v27 = vmul.f32 0.10936069, %v412_v16  ;;  %v339_v31 = vadd.f32 %v338_v29, %v337_v25  ;;  %v343_v32 = vld [vmem:[#allocation2 + $0x8] sm:$0x3f]  ;;  %v458_v54 = vld [vmem:[#allocation4] sm:$0x3f] }
  0x35   : >> { %v347_v33 = vld [vmem:[#allocation2 + $0x3] sm:$0x3f]  ;;  %v335_v36 = vmul.f32 0.0010283801, %v334_v28  ;;  %v344_v37 = vadd.f32 %v343_v32, %v342_v30  ;;  %246 = vrot.lane.b32.xlu0 %v769_v55, %s688_s4  ;;  %v459_v56 = vld [vmem:[#allocation4 + $0xa] sm:$0x3f] }
  0x36   : >> { %v348_v34 = vld [vmem:[#allocation2 + $0x7] sm:$0x3f]  ;;  %v409_v35 = vadd.f32 %v408_v20, %v404_v26  ;;  %v418_v41 = vmul.f32 0.21300554, %v417_v22  ;;  %v340_v42 = vmul.f32 0.007598758, %v339_v31  ;;  %v460_v57 = vadd.f32 %v459_v56, %v458_v54 }
  0x37   : >> { %v349_v38 = vadd.f32 %v348_v34, %v347_v33  ;;  %v352_v39 = vld [vmem:[#allocation2 + $0x4] sm:$0x3f]  ;;  %v336_v44 = vadd.f32 %v335_v36, %v331_v23  ;;  %v345_v45 = vmul.f32 0.036000773, %v344_v37  ;;  %311 = vrot.lane.b32.xlu1 %v777_v63, %s687_s3 }
  0x38   : >> { %v353_v40 = vld [vmem:[#allocation2 + $0x6] sm:$0x3f]  ;;  %v414_v43 = vadd.f32 %v413_v27, %v409_v35  ;;  %v461_v62 = vmul.f32 0.0010283801, %v460_v57 }
  0x39   : >> { %v354_v46 = vadd.f32 %v353_v40, %v352_v39  ;;  %v341_v47 = vadd.f32 %v340_v42, %v336_v44  ;;  %v350_v48 = vmul.f32 0.10936069, %v349_v38  ;;  %309 = vrot.lane.b32.xlu0 %v777_v63, %s688_s4  ;;  %v456_v58 = vld [vmem:[#allocation4 + $0x5] sm:$0x3f] }
  0x3a   : >> { %v795_v49 = vadd.f32 %v418_v41, %v414_v43  ;;  %v463_v59 = vld [vmem:[#allocation4 + $0x1] sm:$0x3f]  ;;  %v464_v60 = vld [vmem:[#allocation4 + $0x9] sm:$0x3f]  ;;  %v457_v61 = vmul.f32 0.26601171, %v456_v58 }
  0x3b   : >> { %v346_v50 = vadd.f32 %v345_v45, %v341_v47  ;;  %v355_v51 = vmul.f32 0.21300554, %v354_v46  ;;  %v465_v0 = vadd.f32 %v464_v60, %v463_v59  ;;  %v468_v1 = vld [vmem:[#allocation4 + $0x2] sm:$0x3f]  ;;  %v469_v2 = vld [vmem:[#allocation4 + $0x8] sm:$0x3f] }
  0x3c   : >> { %423 = vrot.lane.b32.xlu1 %v795_v49, %s684_s28  ;;  %v462_v3 = vadd.f32 %v461_v62, %v457_v61  ;;  %v470_v5 = vadd.f32 %v469_v2, %v468_v1  ;;  %v473_v6 = vld [vmem:[#allocation4 + $0x3] sm:$0x3f] }
  0x3d   : >> { %v351_v52 = vadd.f32 %v350_v48, %v346_v50  ;;  %v466_v4 = vmul.f32 0.007598758, %v465_v0  ;;  %v474_v7 = vld [vmem:[#allocation4 + $0x7] sm:$0x3f] }
  0x3e   : >> { %v471_v9 = vmul.f32 0.036000773, %v470_v5  ;;  %v475_v10 = vadd.f32 %v474_v7, %v473_v6  ;;  %v478_v11 = vld [vmem:[#allocation4 + $0x4] sm:$0x3f] }
  0x3f   : >> { %v801_v53 = vadd.f32 %v355_v51, %v351_v52  ;;  %v467_v8 = vadd.f32 %v466_v4, %v462_v3  ;;  %v479_v12 = vld [vmem:[#allocation4 + $0x6] sm:$0x3f] }
  0x40   : >> { %v476_v14 = vmul.f32 0.10936069, %v475_v10  ;;  %v480_v15 = vadd.f32 %v479_v12, %v478_v11 }
  0x41   : >> { %360 = vrot.lane.b32.xlu0 %v801_v53, %s684_s28  ;;  %365 = vrot.lane.b32.xlu1 %v801_v53, %s685_s29  ;;  %v472_v13 = vadd.f32 %v471_v9, %v467_v8 }
  0x42   : >> { %v481_v17 = vmul.f32 0.21300554, %v480_v15 }
  0x43   : >> { %v477_v16 = vadd.f32 %v476_v14, %v472_v13 }
  0x45   : >> { %357 = vrot.lane.b32.xlu0 %v801_v53, %s683_s27  ;;  %420 = vrot.lane.b32.xlu1 %v795_v49, %s683_s27  ;;  %v855_v18 = vadd.f32 %v481_v17, %v477_v16 }
  0x49   : >> { %367 = vrot.lane.b32.xlu0 %v801_v53, %s686_s30  ;;  %430 = vrot.lane.b32.xlu1 %v795_v49, %s686_s30 }
  0x4d   : >> { %428 = vrot.lane.b32.xlu0 %v795_v49, %s685_s29  ;;  %255 = vrot.lane.b32.xlu1 %v769_v55, %s689_s5 }
  0x51   : >> { %253 = vrot.lane.b32.xlu0 %v769_v55, %s690_s6  ;;  %318 = vrot.lane.b32.xlu1 %v777_v63, %s689_s5 }
  0x55   : >> { %316 = vrot.lane.b32.xlu0 %v777_v63, %s690_s6  ;;  %374 = vrot.lane.b32.xlu1 %v801_v53, %s687_s3 }
  0x59   : >> { %372 = vrot.lane.b32.xlu0 %v801_v53, %s688_s4  ;;  %437 = vrot.lane.b32.xlu1 %v795_v49, %s687_s3 }
  0x5d   : >> { %435 = vrot.lane.b32.xlu0 %v795_v49, %s688_s4  ;;  %262 = vrot.lane.b32.xlu1 %v769_v55, %s691_s7 }
  0x61   : >> { %260 = vrot.lane.b32.xlu0 %v769_v55, %s692_s8  ;;  %325 = vrot.lane.b32.xlu1 %v777_v63, %s691_s7 }
  0x65   : >> { %323 = vrot.lane.b32.xlu0 %v777_v63, %s692_s8  ;;  %381 = vrot.lane.b32.xlu1 %v801_v53, %s689_s5 }
  0x69   : >> { %379 = vrot.lane.b32.xlu0 %v801_v53, %s690_s6  ;;  %444 = vrot.lane.b32.xlu1 %v795_v49, %s689_s5 }
  0x6d   : >> { %442 = vrot.lane.b32.xlu0 %v795_v49, %s690_s6  ;;  %388 = vrot.lane.b32.xlu1 %v801_v53, %s691_s7 }
  0x71   : >> { %386 = vrot.lane.b32.xlu0 %v801_v53, %s692_s8  ;;  %451 = vrot.lane.b32.xlu1 %v795_v49, %s691_s7 }
  0x75   : >> { %449 = vrot.lane.b32.xlu0 %v795_v49, %s692_s8  ;;  %483 = vrot.lane.b32.xlu1 %v855_v18, %s683_s27 }
  0x79   : >> { %486 = vrot.lane.b32.xlu0 %v855_v18, %s684_s28  ;;  %493 = vrot.lane.b32.xlu1 %v855_v18, %s686_s30 }
  0x7d   : >> { %491 = vrot.lane.b32.xlu0 %v855_v18, %s685_s29  ;;  %500 = vrot.lane.b32.xlu1 %v855_v18, %s687_s3 }
  0x81   : >> { %498 = vrot.lane.b32.xlu0 %v855_v18, %s688_s4  ;;  %507 = vrot.lane.b32.xlu1 %v855_v18, %s689_s5 }
  0x85   : >> { %505 = vrot.lane.b32.xlu0 %v855_v18, %s690_s6  ;;  %514 = vrot.lane.b32.xlu1 %v855_v18, %s691_s7 }
  0x89   : >> { %512 = vrot.lane.b32.xlu0 %v855_v18, %s692_s8 }
  0x95   : >> { %v232_v19 = vpop.permute.xlu1 %231  ;;  %v235_v20 = vpop.permute.xlu0 %234 }
  0x96   : >> { %v236_v21 = vadd.f32 %v235_v20, %v769_v55  ;;  %v233_v22 = vmul.f32 0.26601171, %v232_v19 }
  0x98   : >> { %v237_v23 = vmul.f32 0.0010283801, %v236_v21 }
  0x99   : >> { %v240_v24 = vpop.permute.xlu1 %239 }
  0x9a   : >> { %v238_v25 = vadd.f32 %v237_v23, %v233_v22 }
  0x9b   : >> { %v298_v26 = vpop.permute.xlu0 %297 }
  0x9c   : >> { %v299_v54 = vadd.f32 %v298_v26, %v777_v63 }
  0x9d   : >> { %v295_v27 = vpop.permute.xlu1 %294 }
  0x9e   : >> { %v296_v59 = vmul.f32 0.26601171, %v295_v27  ;;  %v300_v0 = vmul.f32 0.0010283801, %v299_v54 }
  0x9f   : >> { %v242_v28 = vpop.permute.xlu0 %241 }
  0xa0   : >> { %v243_v29 = vadd.f32 %v242_v28, %v240_v24  ;;  %v301_v5 = vadd.f32 %v300_v0, %v296_v59 }
  0xa1   : >> { %v305_v30 = vpop.permute.xlu1 %304 }
  0xa2   : >> { %v244_v31 = vmul.f32 0.007598758, %v243_v29 }
  0xa3   : >> { %v303_v32 = vpop.permute.xlu0 %302 }
  0xa4   : >> { %v245_v33 = vadd.f32 %v244_v31, %v238_v25  ;;  %v306_v56 = vadd.f32 %v305_v30, %v303_v32 }
  0xa5   : >> { %v249_v34 = vpop.permute.xlu1 %248 }
  0xa6   : >> { %v307_v1 = vmul.f32 0.007598758, %v306_v56 }
  0xa7   : >> { %v247_v35 = vpop.permute.xlu0 %246 }
  0xa8   : >> { %v250_v57 = vadd.f32 %v249_v34, %v247_v35  ;;  %v308_v10 = vadd.f32 %v307_v1, %v301_v5 }
  0xa9   : >> { %v312_v36 = vpop.permute.xlu1 %311 }
  0xaa   : >> { %v251_v2 = vmul.f32 0.036000773, %v250_v57 }
  0xab   : >> { %v310_v37 = vpop.permute.xlu0 %309 }
  0xac   : >> { %v313_v60 = vadd.f32 %v312_v36, %v310_v37  ;;  %v252_v11 = vadd.f32 %v251_v2, %v245_v33 }
  0xae   : >> { %v424_v38 = vpop.permute.xlu1 %423  ;;  %v314_v6 = vmul.f32 0.036000773, %v313_v60 }
  0xaf   : >> { %v425_v27 = vadd.f32 %v424_v38, %v795_v49 }
  0xb0   : >> { %v315_v14 = vadd.f32 %v314_v6, %v308_v10 }
  0xb3   : >> { %v361_v39 = vpop.permute.xlu0 %360  ;;  %v366_v40 = vpop.permute.xlu1 %365 }
  0xb4   : >> { %v362_v22 = vadd.f32 %v361_v39, %v801_v53 }
  0xb6   : >> { %v363_v34 = vmul.f32 0.0010283801, %v362_v22 }
  0xb7   : >> { %v358_v55 = vpop.permute.xlu0 %357  ;;  %v421_v41 = vpop.permute.xlu1 %420 }
  0xb8   : >> { %v359_v28 = vmul.f32 0.26601171, %v358_v55  ;;  %v422_v35 = vmul.f32 0.26601171, %v421_v41 }
  0xbb   : >> { %v368_v42 = vpop.permute.xlu0 %367  ;;  %v431_v43 = vpop.permute.xlu1 %430 }
  0xbc   : >> { %v369_v24 = vadd.f32 %v368_v42, %v366_v40  ;;  %v426_v40 = vmul.f32 0.0010283801, %v425_v27  ;;  %v364_v42 = vadd.f32 %v363_v34, %v359_v28 }
  0xbe   : >> { %v370_v37 = vmul.f32 0.007598758, %v369_v24  ;;  %v427_v38 = vadd.f32 %v426_v40, %v422_v35 }
  0xbf   : >> { %v429_v44 = vpop.permute.xlu0 %428  ;;  %v256_v45 = vpop.permute.xlu1 %255 }
  0xc0   : >> { %v432_v29 = vadd.f32 %v431_v43, %v429_v44  ;;  %v371_v43 = vadd.f32 %v370_v37, %v364_v42 }
  0xc3   : >> { %v254_v46 = vpop.permute.xlu0 %253  ;;  %v319_v47 = vpop.permute.xlu1 %318 }
  0xc4   : >> { %v257_v61 = vadd.f32 %v256_v45, %v254_v46 }
  0xc6   : >> { %v258_v7 = vmul.f32 0.10936069, %v257_v61 }
  0xc7   : >> { %v317_v48 = vpop.permute.xlu0 %316  ;;  %v375_v50 = vpop.permute.xlu1 %374 }
  0xc8   : >> { %v320_v3 = vadd.f32 %v319_v47, %v317_v48  ;;  %v259_v15 = vadd.f32 %v258_v7, %v252_v11  ;;  %v433_v47 = vmul.f32 0.007598758, %v432_v29 }
  0xca   : >> { %v321_v63 = vmul.f32 0.10936069, %v320_v3  ;;  %v434_v56 = vadd.f32 %v433_v47, %v427_v38 }
  0xcb   : >> { %v373_v51 = vpop.permute.xlu0 %372  ;;  %v438_v52 = vpop.permute.xlu1 %437 }
  0xcc   : >> { %v322_v19 = vadd.f32 %v321_v63, %v315_v14  ;;  %v376_v30 = vadd.f32 %v375_v50, %v373_v51 }
  0xce   : >> { %v377_v48 = vmul.f32 0.036000773, %v376_v30 }
  0xcf   : >> { %v436_v58 = vpop.permute.xlu0 %435  ;;  %v263_v62 = vpop.permute.xlu1 %262 }
  0xd0   : >> { %v439_v45 = vadd.f32 %v438_v52, %v436_v58  ;;  %v378_v41 = vadd.f32 %v377_v48, %v371_v43 }
  0xd2   : >> { %v440_v44 = vmul.f32 0.036000773, %v439_v45 }
  0xd3   : >> { %v261_v4 = vpop.permute.xlu0 %260  ;;  %v326_v9 = vpop.permute.xlu1 %325 }
  0xd4   : >> { %v264_v8 = vadd.f32 %v263_v62, %v261_v4  ;;  %v441_v58 = vadd.f32 %v440_v44, %v434_v56 }
  0xd6   : >> { %v265_v12 = vmul.f32 0.21300554, %v264_v8 }
  0xd7   : >> { %v324_v13 = vpop.permute.xlu0 %323  ;;  %v382_v17 = vpop.permute.xlu1 %381 }
  0xd8   : >> { %v327_v16 = vadd.f32 %v326_v9, %v324_v13  ;;  %v266_v20 = vadd.f32 %v265_v12, %v259_v15 }
  0xda   : >> { %v328_v21 = vmul.f32 0.21300554, %v327_v16  ;;  %v519_v31 = vmul.f32 %v266_v20, %v266_v20 }
  0xdb   : >> { %v380_v23 = vpop.permute.xlu0 %379  ;;  %v445_v26 = vpop.permute.xlu1 %444 }
  0xdc   : >> { %v329_v25 = vadd.f32 %v328_v21, %v322_v19  ;;  %v383_v53 = vadd.f32 %v382_v17, %v380_v23 }
  0xde   : >> { %v520_v32 = vmul.f32 %v329_v25, %v329_v25  ;;  %v883_v33 = vmul.f32 %v329_v25, %v266_v20  ;;  %v384_v50 = vmul.f32 0.10936069, %v383_v53 }
  0xdf   : >> { %v443_v36 = vpop.permute.xlu0 %442  ;;  %v389_v39 = vpop.permute.xlu1 %388 }
  0xe0   : >> { %v530_v46 = vadd.f32 %v520_v32, %v519_v31  ;;  %v446_v49 = vadd.f32 %v445_v26, %v443_v36  ;;  %v385_v60 = vadd.f32 %v384_v50, %v378_v41  ;;  %v525_v37 = vmul.f32 2.0, %v883_v33 }
  0xe2   : >> { %v447_v57 = vmul.f32 0.10936069, %v446_v49  ;;  %v531_v63 = vadd.f32 4e-08, %v530_v46 }
  0xe3   : >> { %v387_v55 = vpop.permute.xlu0 %386  ;;  %v452_v54 = vpop.permute.xlu1 %451 }
  0xe4   : >> { %v390_v51 = vadd.f32 %v389_v39, %v387_v55  ;;  %v448_v0 = vadd.f32 %v447_v57, %v441_v58  ;;  %v526_v39 = vadd.f32 4e-08, %v525_v37 }
  0xe6   : >> { %v391_v59 = vmul.f32 0.21300554, %v390_v51 }
  0xe7   : >> { %v450_v52 = vpop.permute.xlu0 %449  ;;  %v484_v62 = vpop.permute.xlu1 %483 }
  0xe8   : >> { %v453_v61 = vadd.f32 %v452_v54, %v450_v52  ;;  %v392_v1 = vadd.f32 %v391_v59, %v385_v60  ;;  %v485_v20 = vmul.f32 0.26601171, %v484_v62 }
  0xea   : >> { %v454_v2 = vmul.f32 0.21300554, %v453_v61  ;;  %v522_v6 = vsub.f32 %v392_v1, %v519_v31 }
  0xeb   : >> { %v487_v3 = vpop.permute.xlu0 %486  ;;  %v494_v5 = vpop.permute.xlu1 %493 }
  0xec   : >> { %v455_v4 = vadd.f32 %v454_v2, %v448_v0  ;;  %v488_v10 = vadd.f32 %v487_v3, %v855_v18 }
  0xee   : >> { %v523_v7 = vsub.f32 %v455_v4, %v520_v32  ;;  %v489_v16 = vmul.f32 0.0010283801, %v488_v10 }
  0xef   : >> { %v492_v8 = vpop.permute.xlu0 %491  ;;  %v501_v11 = vpop.permute.xlu1 %500 }
  0xf0   : >> { %v532_v9 = vadd.f32 %v523_v7, %v522_v6  ;;  %v495_v13 = vadd.f32 %v494_v5, %v492_v8  ;;  %v490_v23 = vadd.f32 %v489_v16, %v485_v20 }
  0xf2   : >> { %v533_v12 = vadd.f32 4e-06, %v532_v9  ;;  %v496_v21 = vmul.f32 0.007598758, %v495_v13 }
  0xf3   : >> { %v499_v14 = vpop.permute.xlu0 %498  ;;  %v508_v19 = vpop.permute.xlu1 %507 }
  0xf4   : >> { %v534_v15 = vmul.f32 %v533_v12, %v531_v63  ;;  %v502_v17 = vadd.f32 %v501_v11, %v499_v14  ;;  %v497_v27 = vadd.f32 %v496_v21, %v490_v23 }
  0xf6   : >> { %665 = vrcp.f32 %v534_v15  ;;  %v503_v24 = vmul.f32 0.036000773, %v502_v17 }
  0xf7   : >> { %v506_v22 = vpop.permute.xlu0 %505  ;;  %v515_v26 = vpop.permute.xlu1 %514 }
  0xf8   : >> { %v509_v25 = vadd.f32 %v508_v19, %v506_v22  ;;  %v504_v29 = vadd.f32 %v503_v24, %v497_v27 }
  0xfa   : >> { %v510_v28 = vmul.f32 0.10936069, %v509_v25 }
  0xfb   : >> { %v513_v18 = vpop.permute.xlu0 %512 }
  0xfc   : >> { %v516_v30 = vadd.f32 %v515_v26, %v513_v18  ;;  %v511_v31 = vadd.f32 %v510_v28, %v504_v29 }
  0xfe   : >> { %v517_v32 = vmul.f32 0.21300554, %v516_v30 }
 0x100   : >> { %v666_v34 = vpop.eup %665  ;;  %v518_v35 = vadd.f32 %v517_v32, %v511_v31 }
 0x101   : >> { %v536_v36 = vmul.f32 %v666_v34, %v534_v15 }
 0x102   : >> { %v524_v45 = vsub.f32 %v518_v35, %v883_v33 }
 0x103   : >> { %v537_v46 = vsub.f32 2.0, %v536_v36 }
 0x104   : >> { %v527_v53 = vmul.f32 2.0, %v524_v45 }
 0x105   : >> { %v538_v42 = vmul.f32 %v666_v34, %v537_v46 }
 0x106   : >> { %v528_v40 = vadd.f32 4e-06, %v527_v53 }
 0x108   : >> { %v529_v47 = vmul.f32 %v528_v40, %v526_v39  ;;  %179 = sbr.rel (!%p177_p4) target bundleno = 17 (0x11), region = 71 }
 0x10a   : >> { %v539_v48 = vmul.f32 %v538_v42, %v529_v47 }
 0x10c   : >> { %v540_v49 = vsub.f32 1.0, %v539_v48 }
 0x10e   : >> { %543 = vst [vmem:[%s542_s11] sm:$0x3f] %v540_v49 }
 0x10f PF: > { %s12_s9 = sadd.s32 1, %s677_s9  }
 0x110   : > { %p9_p5 = scmp.ge.s32.totalorder %s12_s9, 4  }
 0x112   :  { %11 = sbr.rel (!%p9_p5) target bundleno = 1 (0x1), region = 82 }

</bundles_post_ra>
